<compile_context>
chip_gen: v7x
topology: tpu7x:2x2x1
jax: 0.10.0
libtpu: 0.0.40
codegen_flags: <defaults>
</compile_context>

<pallas_src>
import math

import jax
import jax.numpy as jnp
from jax import lax
from jax.experimental import pallas as pl
from jax.experimental.pallas import tpu as pltpu


# ------------------------------ in-kernel helpers ------------------------------

def _layernorm(x, g, b, eps=1e-5):
    mu = jnp.mean(x, axis=-1, keepdims=True)
    xc = x - mu
    var = jnp.mean(xc * xc, axis=-1, keepdims=True)
    return xc * lax.rsqrt(var + eps) * g + b


# --------------------------- fused whole-model kernel ---------------------------

def _make_fused_kernel(*, B, T, C, H, Hs, Hd, n_out, decoder, scale):
    BT = B * T

    def kernel(tok_ref, emb_ref, wqkv_ref, wproj_ref, fw1_ref, fb1_ref,
               fw2_ref, vecs_ref, wr_ref, bout_ref,
               logits_ref, attn_ref, x_ref):
        l = pl.program_id(0)
        n_l = pl.num_programs(0)

        # ---- layer 0 only: fused embedding gather (tokens live in SMEM) ----
        @pl.when(l == 0)
        def _():
            for r in range(BT):
                tok = tok_ref[r]
                x_ref[r:r + 1, :] = emb_ref[pl.ds(tok, 1), :]

        if decoder:
            row = lax.broadcasted_iota(jnp.int32, (T, T), 0)
            col = lax.broadcasted_iota(jnp.int32, (T, T), 1)
            causal = row >= col

        x2d = x_ref[...]                          # (B*T, C) resident activations

        vecs = vecs_ref[0]                        # (6, C) packed per-layer vectors
        bproj, ln1g, ln1b = vecs[0:1], vecs[1:2], vecs[2:3]
        fb2, ln2g, ln2b = vecs[3:4], vecs[4:5], vecs[5:6]
        fb1 = fb1_ref[0]                          # (1, Hd)

        # All-head, all-batch QKV projection: ONE (B*T,C)@(C,3*H*Hs) matmul.
        qkv = jnp.dot(x2d, wqkv_ref[0], preferred_element_type=jnp.float32)

        head_blocks = []   # per-batch (T, H*Hs) head-concatenated PV outputs
        attn_blocks = []   # per (b, h) (T, T) softmax maps, (b major, h minor)
        for b in range(B):
            r0 = b * T
            outs = []
            for h in range(H):
                q = qkv[r0:r0 + T, h * Hs:(h + 1) * Hs]
                k = qkv[r0:r0 + T, (H + h) * Hs:(H + h + 1) * Hs]
                v = qkv[r0:r0 + T, (2 * H + h) * Hs:(2 * H + h + 1) * Hs]
                # NOTE: module scales by channels**0.5 == sqrt(n_embd),
                # NOT sqrt(head_size); keep it that way (matches PyTorch).
                s = jnp.dot(q, k.T, preferred_element_type=jnp.float32) * scale
                if decoder:
                    # -1e30 (not -inf): the diagonal is always unmasked so this
                    # is exact, and it stays finite if a fully-masked row ever
                    # appeared (e.g. padding masks added later).
                    s = jnp.where(causal, s, -1e30)
                m = jnp.max(s, axis=-1, keepdims=True)
                e = jnp.exp(s - m)
                p = e / jnp.sum(e, axis=-1, keepdims=True)   # exact softmax
                attn_blocks.append(p)
                outs.append(jnp.dot(p, v, preferred_element_type=jnp.float32))
            head_blocks.append(jnp.concatenate(outs, axis=1))          # (T, C)

        heads_out = jnp.concatenate(head_blocks, axis=0)               # (B*T, C)
        # Head-concat + output projection folded into ONE (B*T,C)@(C,C) matmul.
        attn_out = jnp.dot(heads_out, wproj_ref[0],
                           preferred_element_type=jnp.float32) + bproj
        h1 = _layernorm(x2d + attn_out, ln1g, ln1b)
        # FeedForward: Linear -> ReLU -> Linear (dropout = eval identity).
        f = jnp.maximum(jnp.dot(h1, fw1_ref[0],
                                preferred_element_type=jnp.float32) + fb1, 0.0)
        f = jnp.dot(f, fw2_ref[0], preferred_element_type=jnp.float32) + fb2
        xn = _layernorm(h1 + f, ln2g, ln2b)
        x_ref[...] = xn            # carry activations to the next layer in VMEM

        # ---- last layer only: attention maps + fused classifier head ----
        @pl.when(l == n_l - 1)
        def _():
            # Single consolidated store of the last block's attention maps,
            # rows ordered (b, h, t); unpacked in the wrapper.
            attn_ref[...] = jnp.concatenate(attn_blocks,
                                            axis=0).astype(attn_ref.dtype)
            # Classifier head: flatten(B, T*C) @ W_out^T expressed as
            #   sum_t x[:, t, :] @ W_out[:, t*C:(t+1)*C]^T
            # (avoids an in-kernel sublane->lane reshape).
            acc = jnp.zeros((B, n_out), jnp.float32)
            for t in range(T):
                xt = jnp.concatenate(
                    [xn[b * T + t:b * T + t + 1, :] for b in range(B)], axis=0)
                acc = acc + jnp.dot(xt, wr_ref[t],
                                    preferred_element_type=jnp.float32)
            logits_ref[...] = (acc + bout_ref[...]).astype(logits_ref.dtype)

    return kernel


# ------------------------------ parameter plumbing ------------------------------

def _uniform(key, shape, bound):
    return jax.random.uniform(key, shape, jnp.float32, -bound, bound)


def init_params(key, *, vocab_size, block_size, n_embd, n_head, n_hidden,
                n_output, n_layer):
    """PyTorch-layout parameters (weights as (out_features, in_features))."""
    Hs = n_embd // n_head
    ks = jax.random.split(key, n_layer + 3)
    params = {"tok_emb": 0.02 * jax.random.normal(ks[0], (vocab_size, n_embd),
                                                  jnp.float32)}
    bc = 1.0 / math.sqrt(n_embd)
    bh = 1.0 / math.sqrt(n_hidden)
    blocks = []
    for li in range(n_layer):
        bk = jax.random.split(ks[1 + li], 9)
        blocks.append({
            "wq": _uniform(bk[0], (n_head, Hs, n_embd), bc),
            "wk": _uniform(bk[1], (n_head, Hs, n_embd), bc),
            "wv": _uniform(bk[2], (n_head, Hs, n_embd), bc),
            "wproj": _uniform(bk[3], (n_embd, n_embd), bc),
            "bproj": _uniform(bk[4], (n_embd,), bc),
            "ln1_g": jnp.ones((n_embd,), jnp.float32),
            "ln1_b": jnp.zeros((n_embd,), jnp.float32),
            "w1": _uniform(bk[5], (n_hidden, n_embd), bc),
            "b1": _uniform(bk[6], (n_hidden,), bc),
            "w2": _uniform(bk[7], (n_embd, n_hidden), bh),
            "b2": _uniform(bk[8], (n_embd,), bh),
            "ln2_g": jnp.ones((n_embd,), jnp.float32),
            "ln2_b": jnp.zeros((n_embd,), jnp.float32),
        })
    params["blocks"] = blocks
    d_in = n_embd * block_size
    bo = 1.0 / math.sqrt(d_in)
    params["w_out"] = _uniform(ks[-2], (n_output, d_in), bo)
    params["b_out"] = _uniform(ks[-1], (n_output,), bo)
    return params


def pack_params(params, *, n_head, block_size):
    """ONE-TIME (hoisted) conversion of PyTorch-layout params into the stacked,
    pre-transposed layout the fused kernel consumes."""
    blocks = params["blocks"]
    C = blocks[0]["wq"].shape[2]
    Hs = C // n_head
    T = block_size

    def per_layer(bp):
        def t_(w):  # (H, Hs, C) torch layout -> (C, H*Hs), head-major columns
            return jnp.transpose(w, (2, 0, 1)).reshape(C, n_head * Hs)
        wqkv = jnp.concatenate([t_(bp["wq"]), t_(bp["wk"]), t_(bp["wv"])],
                               axis=1)                                # (C, 3*H*Hs)
        vecs = jnp.stack([bp["bproj"], bp["ln1_g"], bp["ln1_b"],
                          bp["b2"], bp["ln2_g"], bp["ln2_b"]], axis=0)  # (6, C)
        return (wqkv, bp["wproj"].T, bp["w1"].T, bp["b1"].reshape(1, -1),
                bp["w2"].T, vecs)

    per = [per_layer(bp) for bp in blocks]
    stk = lambda i: jnp.stack([p[i] for p in per], axis=0).astype(jnp.float32)

    w_out = params["w_out"]                       # (n_out, T*C)
    w_out_r = jnp.stack([w_out[:, t * C:(t + 1) * C].T for t in range(T)],
                        axis=0).astype(jnp.float32)                 # (T, C, n_out)

    return {
        "tok_emb": params["tok_emb"].astype(jnp.float32),   # (V, C)
        "wqkv": stk(0),      # (L, C, 3*H*Hs)
        "wprojT": stk(1),    # (L, C, C)
        "fw1": stk(2),       # (L, C, Hd)
        "fb1": stk(3),       # (L, 1, Hd)
        "fw2": stk(4),       # (L, Hd, C)
        "vecs": stk(5),      # (L, 6, C)  [bproj, ln1_g, ln1_b, b2, ln2_g, ln2_b]
        "w_out_r": w_out_r,  # (T, C, n_out)
        "b_out": params["b_out"].reshape(1, -1).astype(jnp.float32),
    }


# ------------------------------ full model forward ------------------------------

def transformer_classifier_forward(tokens, packed, *, n_head, decoder=False,
                                   alibi=False, targets=None):
    """Pallas-backed TransformerClassifier.forward (eval mode, alibi=False)."""
    if alibi:
        # TODO(synk): alibi=True path (positional embedding + ALiBi bias) not implemented.
        raise NotImplementedError("alibi=True path not implemented")

    B, T = tokens.shape
    V, C = packed["tok_emb"].shape
    L = packed["wqkv"].shape[0]
    H = n_head
    Hs = C // H
    Hd = packed["fw1"].shape[2]
    n_out = packed["b_out"].shape[1]

    kernel = _make_fused_kernel(B=B, T=T, C=C, H=H, Hs=Hs, Hd=Hd, n_out=n_out,
                                decoder=decoder, scale=1.0 / math.sqrt(C))

    grid_spec = pltpu.PrefetchScalarGridSpec(
        num_scalar_prefetch=1,               # flat token ids -> SMEM
        grid=(L,),                           # sequential layer axis (carried x)
        in_specs=[
            pl.BlockSpec((V, C), lambda l, tok: (0, 0)),               # tok_emb
            pl.BlockSpec((1, C, 3 * H * Hs), lambda l, tok: (l, 0, 0)),  # Wqkv^T
            pl.BlockSpec((1, C, C), lambda l, tok: (l, 0, 0)),         # Wproj^T
            pl.BlockSpec((1, C, Hd), lambda l, tok: (l, 0, 0)),        # W1^T
            pl.BlockSpec((1, 1, Hd), lambda l, tok: (l, 0, 0)),        # b1
            pl.BlockSpec((1, Hd, C), lambda l, tok: (l, 0, 0)),        # W2^T
            pl.BlockSpec((1, 6, C), lambda l, tok: (l, 0, 0)),         # packed vecs
            pl.BlockSpec((T, C, n_out), lambda l, tok: (0, 0, 0)),     # W_out (per-t)
            pl.BlockSpec((1, n_out), lambda l, tok: (0, 0)),           # b_out
        ],
        out_specs=(
            pl.BlockSpec((B, n_out), lambda l, tok: (0, 0)),           # logits
            pl.BlockSpec((B * H * T, T), lambda l, tok: (0, 0)),       # attn maps
        ),
        scratch_shapes=[pltpu.VMEM((B * T, C), jnp.float32)],          # carried x
    )

    logits, attn_flat = pl.pallas_call(
        kernel,
        out_shape=(jax.ShapeDtypeStruct((B, n_out), jnp.float32),
                   jax.ShapeDtypeStruct((B * H * T, T), jnp.float32)),
        grid_spec=grid_spec,
        compiler_params=pltpu.CompilerParams(
            dimension_semantics=("arbitrary",)),
    )(tokens.reshape(-1).astype(jnp.int32),
      packed["tok_emb"], packed["wqkv"], packed["wprojT"], packed["fw1"],
      packed["fb1"], packed["fw2"], packed["vecs"], packed["w_out_r"],
      packed["b_out"])

    attn = attn_flat.reshape(B, H, T, T)
    attention_maps = [attn[:, h] for h in range(H)]

    if targets is None:
        loss = None
    else:
        logp = jax.nn.log_softmax(logits, axis=-1)
        loss = -jnp.mean(jnp.take_along_axis(logp, targets[:, None], axis=-1))

    return logits, loss, attention_maps


# ----------------------------------- reference ----------------------------------

def _layernorm_ref(x, g, b, eps=1e-5):
    mu = x.mean(-1, keepdims=True)
    xc = x - mu
    var = (xc * xc).mean(-1, keepdims=True)
    return xc / jnp.sqrt(var + eps) * g + b


def reference_forward(tokens, params, *, n_head, decoder=False):
    x = params["tok_emb"][tokens]
    B, T, C = x.shape
    attn_maps = None
    for bp in params["blocks"]:
        outs, maps = [], []
        for h in range(n_head):
            q = x @ bp["wq"][h].T
            k = x @ bp["wk"][h].T
            v = x @ bp["wv"][h].T
            s = (q @ jnp.swapaxes(k, -1, -2)) / math.sqrt(C)
            if decoder:
                tril = jnp.tril(jnp.ones((T, T)))
                s = jnp.where(tril == 0, -jnp.inf, s)
            p = jax.nn.softmax(s, axis=-1)
            maps.append(p)
            outs.append(p @ v)
        y = jnp.concatenate(outs, axis=-1) @ bp["wproj"].T + bp["bproj"]
        x1 = _layernorm_ref(x + y, bp["ln1_g"], bp["ln1_b"])
        f = jnp.maximum(x1 @ bp["w1"].T + bp["b1"], 0.0) @ bp["w2"].T + bp["b2"]
        x = _layernorm_ref(x1 + f, bp["ln2_g"], bp["ln2_b"])
        attn_maps = maps
    logits = x.reshape(B, -1) @ params["w_out"].T + params["b_out"]
    return logits, attn_maps


# ------------------------------------- main --------------------------------------

if __name__ == "__main__":
    key = jax.random.PRNGKey(0)
    pkey, tkey = jax.random.split(key)

    # Small shapes consistent with the module.
    vocab_size = 50
    block_size = 8        # T
    n_embd = 32           # C (== n_input)
    n_head = 2            # head_size = 16
    n_hidden = 64
    n_output = 4
    n_layer = 2
    batch = 2

    params = init_params(pkey, vocab_size=vocab_size, block_size=block_size,
                         n_embd=n_embd, n_head=n_head, n_hidden=n_hidden,
                         n_output=n_output, n_layer=n_layer)
    # Weight re-layout is hoisted out of the forward pass (done once here).
    packed = pack_params(params, n_head=n_head, block_size=block_size)
    tokens = jax.random.randint(tkey, (batch, block_size), 0, vocab_size)

    for dec in (False, True):
        logits, loss, attn_maps = transformer_classifier_forward(
            tokens, packed, n_head=n_head, decoder=dec, alibi=False,
            targets=None)
        jax.block_until_ready((logits, attn_maps))

        ref_logits, ref_maps = reference_forward(tokens, params,
                                                 n_head=n_head, decoder=dec)
        assert logits.shape == (batch, n_output)
        assert loss is None
        assert len(attn_maps) == n_head
        assert attn_maps[0].shape == (batch, block_size, block_size)
        assert jnp.allclose(logits, ref_logits, atol=1e-2, rtol=1e-2)
        for h in range(n_head):
            assert jnp.allclose(attn_maps[h], ref_maps[h], atol=1e-2, rtol=1e-2)
            # exact (non-approx) softmax: attention rows sum to 1
            assert jnp.allclose(attn_maps[h].sum(-1), 1.0, atol=1e-4)

    print("KERNEL_OK")
</pallas_src>

<mosaic_0001>
module attributes {stable_mosaic.version = 11 : i64} {
  func.func @kernel(%arg0: i32, %arg1: memref<16xi32, #tpu.memory_space<smem>>, %arg2: memref<50x32xf32, #tpu.memory_space<vmem>>, %arg3: memref<1x32x96xf32, #tpu.memory_space<vmem>>, %arg4: memref<1x32x32xf32, #tpu.memory_space<vmem>>, %arg5: memref<1x32x64xf32, #tpu.memory_space<vmem>>, %arg6: memref<1x1x64xf32, #tpu.memory_space<vmem>>, %arg7: memref<1x64x32xf32, #tpu.memory_space<vmem>>, %arg8: memref<1x6x32xf32, #tpu.memory_space<vmem>>, %arg9: memref<8x32x4xf32, #tpu.memory_space<vmem>>, %arg10: memref<1x4xf32, #tpu.memory_space<vmem>>, %arg11: memref<2x4xf32, #tpu.memory_space<vmem>>, %arg12: memref<32x8xf32, #tpu.memory_space<vmem>>, %arg13: memref<16x32xf32, #tpu.memory_space<vmem>>) attributes {dimension_semantics = [#tpu.dimension_semantics<arbitrary>], iteration_bounds = array<i64: 2>, scalar_prefetch = 1 : i64, scratch_operands = 1 : i64, tpu.core_type = #tpu.core_type<tc>, window_params = [{pipeline_mode = #tpu.pipeline_mode<synchronous>, transform_indices = @transform_0, window_bounds = array<i64: 50, 32>}, {transform_indices = @transform_1, window_bounds = array<i64: 1, 32, 96>}, {transform_indices = @transform_2, window_bounds = array<i64: 1, 32, 32>}, {transform_indices = @transform_3, window_bounds = array<i64: 1, 32, 64>}, {transform_indices = @transform_4, window_bounds = array<i64: 1, 1, 64>}, {transform_indices = @transform_5, window_bounds = array<i64: 1, 64, 32>}, {transform_indices = @transform_6, window_bounds = array<i64: 1, 6, 32>}, {pipeline_mode = #tpu.pipeline_mode<synchronous>, transform_indices = @transform_7, window_bounds = array<i64: 8, 32, 4>}, {pipeline_mode = #tpu.pipeline_mode<synchronous>, transform_indices = @transform_8, window_bounds = array<i64: 1, 4>}, {pipeline_mode = #tpu.pipeline_mode<synchronous>, transform_indices = @transform_9, window_bounds = array<i64: 2, 4>}, {pipeline_mode = #tpu.pipeline_mode<synchronous>, transform_indices = @transform_10, window_bounds = array<i64: 32, 8>}]} {
    %c0_i32 = arith.constant 0 : i32
    %0 = arith.cmpi eq, %arg0, %c0_i32 : i32
    %1 = arith.extui %0 : i1 to i32
    %c0_i32_0 = arith.constant 0 : i32
    %2 = arith.cmpi ne, %1, %c0_i32_0 : i32
    scf.if %2 {
      %c0_57 = arith.constant 0 : index
      %151 = memref.load %arg1[%c0_57] : memref<16xi32, #tpu.memory_space<smem>>
      %152 = arith.index_cast %151 : i32 to index
      %c0_58 = arith.constant 0 : index
      %153 = vector.load %arg2[%152, %c0_58] : memref<50x32xf32, #tpu.memory_space<vmem>>, vector<1x32xf32>
      %c0_59 = arith.constant 0 : index
      %c0_60 = arith.constant 0 : index
      %154 = vector.load %arg13[%c0_59, %c0_60] : memref<16x32xf32, #tpu.memory_space<vmem>>, vector<1x32xf32>
      tpu.vector_store %arg13[%c0_59, %c0_60], %153 {strides = array<i32>} : memref<16x32xf32, #tpu.memory_space<vmem>>, vector<1x32xf32>,
      %c1 = arith.constant 1 : index
      %155 = memref.load %arg1[%c1] : memref<16xi32, #tpu.memory_space<smem>>
      %156 = arith.index_cast %155 : i32 to index
      %c0_61 = arith.constant 0 : index
      %157 = vector.load %arg2[%156, %c0_61] : memref<50x32xf32, #tpu.memory_space<vmem>>, vector<1x32xf32>
      %c1_62 = arith.constant 1 : index
      %c0_63 = arith.constant 0 : index
      %158 = vector.load %arg13[%c1_62, %c0_63] : memref<16x32xf32, #tpu.memory_space<vmem>>, vector<1x32xf32>
      tpu.vector_store %arg13[%c1_62, %c0_63], %157 {strides = array<i32>} : memref<16x32xf32, #tpu.memory_space<vmem>>, vector<1x32xf32>,
      %c2 = arith.constant 2 : index
      %159 = memref.load %arg1[%c2] : memref<16xi32, #tpu.memory_space<smem>>
      %160 = arith.index_cast %159 : i32 to index
      %c0_64 = arith.constant 0 : index
      %161 = vector.load %arg2[%160, %c0_64] : memref<50x32xf32, #tpu.memory_space<vmem>>, vector<1x32xf32>
      %c2_65 = arith.constant 2 : index
      %c0_66 = arith.constant 0 : index
      %162 = vector.load %arg13[%c2_65, %c0_66] : memref<16x32xf32, #tpu.memory_space<vmem>>, vector<1x32xf32>
      tpu.vector_store %arg13[%c2_65, %c0_66], %161 {strides = array<i32>} : memref<16x32xf32, #tpu.memory_space<vmem>>, vector<1x32xf32>,
      %c3 = arith.constant 3 : index
      %163 = memref.load %arg1[%c3] : memref<16xi32, #tpu.memory_space<smem>>
      %164 = arith.index_cast %163 : i32 to index
      %c0_67 = arith.constant 0 : index
      %165 = vector.load %arg2[%164, %c0_67] : memref<50x32xf32, #tpu.memory_space<vmem>>, vector<1x32xf32>
      %c3_68 = arith.constant 3 : index
      %c0_69 = arith.constant 0 : index
      %166 = vector.load %arg13[%c3_68, %c0_69] : memref<16x32xf32, #tpu.memory_space<vmem>>, vector<1x32xf32>
      tpu.vector_store %arg13[%c3_68, %c0_69], %165 {strides = array<i32>} : memref<16x32xf32, #tpu.memory_space<vmem>>, vector<1x32xf32>,
      %c4 = arith.constant 4 : index
      %167 = memref.load %arg1[%c4] : memref<16xi32, #tpu.memory_space<smem>>
      %168 = arith.index_cast %167 : i32 to index
      %c0_70 = arith.constant 0 : index
      %169 = vector.load %arg2[%168, %c0_70] : memref<50x32xf32, #tpu.memory_space<vmem>>, vector<1x32xf32>
      %c4_71 = arith.constant 4 : index
      %c0_72 = arith.constant 0 : index
      %170 = vector.load %arg13[%c4_71, %c0_72] : memref<16x32xf32, #tpu.memory_space<vmem>>, vector<1x32xf32>
      tpu.vector_store %arg13[%c4_71, %c0_72], %169 {strides = array<i32>} : memref<16x32xf32, #tpu.memory_space<vmem>>, vector<1x32xf32>,
      %c5 = arith.constant 5 : index
      %171 = memref.load %arg1[%c5] : memref<16xi32, #tpu.memory_space<smem>>
      %172 = arith.index_cast %171 : i32 to index
      %c0_73 = arith.constant 0 : index
      %173 = vector.load %arg2[%172, %c0_73] : memref<50x32xf32, #tpu.memory_space<vmem>>, vector<1x32xf32>
      %c5_74 = arith.constant 5 : index
      %c0_75 = arith.constant 0 : index
      %174 = vector.load %arg13[%c5_74, %c0_75] : memref<16x32xf32, #tpu.memory_space<vmem>>, vector<1x32xf32>
      tpu.vector_store %arg13[%c5_74, %c0_75], %173 {strides = array<i32>} : memref<16x32xf32, #tpu.memory_space<vmem>>, vector<1x32xf32>,
      %c6 = arith.constant 6 : index
      %175 = memref.load %arg1[%c6] : memref<16xi32, #tpu.memory_space<smem>>
      %176 = arith.index_cast %175 : i32 to index
      %c0_76 = arith.constant 0 : index
      %177 = vector.load %arg2[%176, %c0_76] : memref<50x32xf32, #tpu.memory_space<vmem>>, vector<1x32xf32>
      %c6_77 = arith.constant 6 : index
      %c0_78 = arith.constant 0 : index
      %178 = vector.load %arg13[%c6_77, %c0_78] : memref<16x32xf32, #tpu.memory_space<vmem>>, vector<1x32xf32>
      tpu.vector_store %arg13[%c6_77, %c0_78], %177 {strides = array<i32>} : memref<16x32xf32, #tpu.memory_space<vmem>>, vector<1x32xf32>,
      %c7 = arith.constant 7 : index
      %179 = memref.load %arg1[%c7] : memref<16xi32, #tpu.memory_space<smem>>
      %180 = arith.index_cast %179 : i32 to index
      %c0_79 = arith.constant 0 : index
      %181 = vector.load %arg2[%180, %c0_79] : memref<50x32xf32, #tpu.memory_space<vmem>>, vector<1x32xf32>
      %c7_80 = arith.constant 7 : index
      %c0_81 = arith.constant 0 : index
      %182 = vector.load %arg13[%c7_80, %c0_81] : memref<16x32xf32, #tpu.memory_space<vmem>>, vector<1x32xf32>
      tpu.vector_store %arg13[%c7_80, %c0_81], %181 {strides = array<i32>} : memref<16x32xf32, #tpu.memory_space<vmem>>, vector<1x32xf32>,
      %c8 = arith.constant 8 : index
      %183 = memref.load %arg1[%c8] : memref<16xi32, #tpu.memory_space<smem>>
      %184 = arith.index_cast %183 : i32 to index
      %c0_82 = arith.constant 0 : index
      %185 = vector.load %arg2[%184, %c0_82] : memref<50x32xf32, #tpu.memory_space<vmem>>, vector<1x32xf32>
      %c8_83 = arith.constant 8 : index
      %c0_84 = arith.constant 0 : index
      %186 = vector.load %arg13[%c8_83, %c0_84] : memref<16x32xf32, #tpu.memory_space<vmem>>, vector<1x32xf32>
      tpu.vector_store %arg13[%c8_83, %c0_84], %185 {strides = array<i32>} : memref<16x32xf32, #tpu.memory_space<vmem>>, vector<1x32xf32>,
      %c9 = arith.constant 9 : index
      %187 = memref.load %arg1[%c9] : memref<16xi32, #tpu.memory_space<smem>>
      %188 = arith.index_cast %187 : i32 to index
      %c0_85 = arith.constant 0 : index
      %189 = vector.load %arg2[%188, %c0_85] : memref<50x32xf32, #tpu.memory_space<vmem>>, vector<1x32xf32>
      %c9_86 = arith.constant 9 : index
      %c0_87 = arith.constant 0 : index
      %190 = vector.load %arg13[%c9_86, %c0_87] : memref<16x32xf32, #tpu.memory_space<vmem>>, vector<1x32xf32>
      tpu.vector_store %arg13[%c9_86, %c0_87], %189 {strides = array<i32>} : memref<16x32xf32, #tpu.memory_space<vmem>>, vector<1x32xf32>,
      %c10 = arith.constant 10 : index
      %191 = memref.load %arg1[%c10] : memref<16xi32, #tpu.memory_space<smem>>
      %192 = arith.index_cast %191 : i32 to index
      %c0_88 = arith.constant 0 : index
      %193 = vector.load %arg2[%192, %c0_88] : memref<50x32xf32, #tpu.memory_space<vmem>>, vector<1x32xf32>
      %c10_89 = arith.constant 10 : index
      %c0_90 = arith.constant 0 : index
      %194 = vector.load %arg13[%c10_89, %c0_90] : memref<16x32xf32, #tpu.memory_space<vmem>>, vector<1x32xf32>
      tpu.vector_store %arg13[%c10_89, %c0_90], %193 {strides = array<i32>} : memref<16x32xf32, #tpu.memory_space<vmem>>, vector<1x32xf32>,
      %c11 = arith.constant 11 : index
      %195 = memref.load %arg1[%c11] : memref<16xi32, #tpu.memory_space<smem>>
      %196 = arith.index_cast %195 : i32 to index
      %c0_91 = arith.constant 0 : index
      %197 = vector.load %arg2[%196, %c0_91] : memref<50x32xf32, #tpu.memory_space<vmem>>, vector<1x32xf32>
      %c11_92 = arith.constant 11 : index
      %c0_93 = arith.constant 0 : index
      %198 = vector.load %arg13[%c11_92, %c0_93] : memref<16x32xf32, #tpu.memory_space<vmem>>, vector<1x32xf32>
      tpu.vector_store %arg13[%c11_92, %c0_93], %197 {strides = array<i32>} : memref<16x32xf32, #tpu.memory_space<vmem>>, vector<1x32xf32>,
      %c12 = arith.constant 12 : index
      %199 = memref.load %arg1[%c12] : memref<16xi32, #tpu.memory_space<smem>>
      %200 = arith.index_cast %199 : i32 to index
      %c0_94 = arith.constant 0 : index
      %201 = vector.load %arg2[%200, %c0_94] : memref<50x32xf32, #tpu.memory_space<vmem>>, vector<1x32xf32>
      %c12_95 = arith.constant 12 : index
      %c0_96 = arith.constant 0 : index
      %202 = vector.load %arg13[%c12_95, %c0_96] : memref<16x32xf32, #tpu.memory_space<vmem>>, vector<1x32xf32>
      tpu.vector_store %arg13[%c12_95, %c0_96], %201 {strides = array<i32>} : memref<16x32xf32, #tpu.memory_space<vmem>>, vector<1x32xf32>,
      %c13 = arith.constant 13 : index
      %203 = memref.load %arg1[%c13] : memref<16xi32, #tpu.memory_space<smem>>
      %204 = arith.index_cast %203 : i32 to index
      %c0_97 = arith.constant 0 : index
      %205 = vector.load %arg2[%204, %c0_97] : memref<50x32xf32, #tpu.memory_space<vmem>>, vector<1x32xf32>
      %c13_98 = arith.constant 13 : index
      %c0_99 = arith.constant 0 : index
      %206 = vector.load %arg13[%c13_98, %c0_99] : memref<16x32xf32, #tpu.memory_space<vmem>>, vector<1x32xf32>
      tpu.vector_store %arg13[%c13_98, %c0_99], %205 {strides = array<i32>} : memref<16x32xf32, #tpu.memory_space<vmem>>, vector<1x32xf32>,
      %c14 = arith.constant 14 : index
      %207 = memref.load %arg1[%c14] : memref<16xi32, #tpu.memory_space<smem>>
      %208 = arith.index_cast %207 : i32 to index
      %c0_100 = arith.constant 0 : index
      %209 = vector.load %arg2[%208, %c0_100] : memref<50x32xf32, #tpu.memory_space<vmem>>, vector<1x32xf32>
      %c14_101 = arith.constant 14 : index
      %c0_102 = arith.constant 0 : index
      %210 = vector.load %arg13[%c14_101, %c0_102] : memref<16x32xf32, #tpu.memory_space<vmem>>, vector<1x32xf32>
      tpu.vector_store %arg13[%c14_101, %c0_102], %209 {strides = array<i32>} : memref<16x32xf32, #tpu.memory_space<vmem>>, vector<1x32xf32>,
      %c15 = arith.constant 15 : index
      %211 = memref.load %arg1[%c15] : memref<16xi32, #tpu.memory_space<smem>>
      %212 = arith.index_cast %211 : i32 to index
      %c0_103 = arith.constant 0 : index
      %213 = vector.load %arg2[%212, %c0_103] : memref<50x32xf32, #tpu.memory_space<vmem>>, vector<1x32xf32>
      %c15_104 = arith.constant 15 : index
      %c0_105 = arith.constant 0 : index
      %214 = vector.load %arg13[%c15_104, %c0_105] : memref<16x32xf32, #tpu.memory_space<vmem>>, vector<1x32xf32>
      tpu.vector_store %arg13[%c15_104, %c0_105], %213 {strides = array<i32>} : memref<16x32xf32, #tpu.memory_space<vmem>>, vector<1x32xf32>,
    } else {
    }
    %c0 = arith.constant 0 : index
    %c0_1 = arith.constant 0 : index
    %3 = vector.load %arg13[%c0, %c0_1] : memref<16x32xf32, #tpu.memory_space<vmem>>, vector<16x32xf32>
    %c0_2 = arith.constant 0 : index
    %c0_3 = arith.constant 0 : index
    %c0_4 = arith.constant 0 : index
    %4 = vector.load %arg8[%c0_2, %c0_3, %c0_4] : memref<1x6x32xf32, #tpu.memory_space<vmem>>, vector<1x6x32xf32>
    %5 = vector.shape_cast %4 : vector<1x6x32xf32> to vector<6x32xf32>
    %6 = vector.extract_strided_slice %5 {offsets = [0, 0], sizes = [1, 32], strides = [1, 1]} : vector<6x32xf32> to vector<1x32xf32>
    %7 = vector.extract_strided_slice %5 {offsets = [1, 0], sizes = [1, 32], strides = [1, 1]} : vector<6x32xf32> to vector<1x32xf32>
    %8 = vector.extract_strided_slice %5 {offsets = [2, 0], sizes = [1, 32], strides = [1, 1]} : vector<6x32xf32> to vector<1x32xf32>
    %9 = vector.extract_strided_slice %5 {offsets = [3, 0], sizes = [1, 32], strides = [1, 1]} : vector<6x32xf32> to vector<1x32xf32>
    %10 = vector.extract_strided_slice %5 {offsets = [4, 0], sizes = [1, 32], strides = [1, 1]} : vector<6x32xf32> to vector<1x32xf32>
    %11 = vector.extract_strided_slice %5 {offsets = [5, 0], sizes = [1, 32], strides = [1, 1]} : vector<6x32xf32> to vector<1x32xf32>
    %c0_5 = arith.constant 0 : index
    %c0_6 = arith.constant 0 : index
    %c0_7 = arith.constant 0 : index
    %12 = vector.load %arg6[%c0_5, %c0_6, %c0_7] : memref<1x1x64xf32, #tpu.memory_space<vmem>>, vector<1x1x64xf32>
    %13 = vector.shape_cast %12 : vector<1x1x64xf32> to vector<1x64xf32>
    %c0_8 = arith.constant 0 : index
    %c0_9 = arith.constant 0 : index
    %c0_10 = arith.constant 0 : index
    %14 = vector.load %arg3[%c0_8, %c0_9, %c0_10] : memref<1x32x96xf32, #tpu.memory_space<vmem>>, vector<1x32x96xf32>
    %15 = vector.shape_cast %14 : vector<1x32x96xf32> to vector<32x96xf32>
    %cst = arith.constant dense<0.000000e+00> : vector<16x96xf32>
    %16 = tpu.matmul %3, %15, %cst {dimension_numbers = #tpu.dot_dimension_numbers<[1], [0], [0], [1], [0, 0, 1, 1], [], []>} : vector<16x32xf32>, vector<32x96xf32>, vector<16x96xf32> -> vector<16x96xf32>
    %17 = vector.extract_strided_slice %16 {offsets = [0, 0], sizes = [8, 16], strides = [1, 1]} : vector<16x96xf32> to vector<8x16xf32>
    %18 = vector.extract_strided_slice %16 {offsets = [0, 32], sizes = [8, 16], strides = [1, 1]} : vector<16x96xf32> to vector<8x16xf32>
    %19 = vector.extract_strided_slice %16 {offsets = [0, 64], sizes = [8, 16], strides = [1, 1]} : vector<16x96xf32> to vector<8x16xf32>
    %20 = tpu.transpose %18, [1, 0] : vector<8x16xf32> -> vector<16x8xf32>
    %cst_11 = arith.constant dense<0.000000e+00> : vector<8x8xf32>
    %21 = tpu.matmul %17, %20, %cst_11 {dimension_numbers = #tpu.dot_dimension_numbers<[1], [0], [0], [1], [0, 0, 1, 1], [], []>} : vector<8x16xf32>, vector<16x8xf32>, vector<8x8xf32> -> vector<8x8xf32>
    %cst_12 = arith.constant 0.176776692 : f32
    %22 = vector.broadcast %cst_12 : f32 to vector<8x8xf32>
    %23 = arith.mulf %21, %22 : vector<8x8xf32>
    %cst_13 = arith.constant dense<0xFF800000> : vector<8xf32>
    %24 = vector.multi_reduction <maximumf>, %23, %cst_13 [1] : vector<8x8xf32> to vector<8xf32>
    %25 = vector.shape_cast %24 : vector<8xf32> to vector<8x1xf32>
    %26 = vector.broadcast %25 : vector<8x1xf32> to vector<8x8xf32>
    %27 = arith.subf %23, %26 : vector<8x8xf32>
    %28 = math.exp %27 : vector<8x8xf32>
    %cst_14 = arith.constant dense<0.000000e+00> : vector<8xf32>
    %29 = vector.multi_reduction <add>, %28, %cst_14 [1] : vector<8x8xf32> to vector<8xf32>
    %30 = vector.shape_cast %29 : vector<8xf32> to vector<8x1xf32>
    %31 = vector.broadcast %30 : vector<8x1xf32> to vector<8x8xf32>
    %32 = arith.divf %28, %31 : vector<8x8xf32>
    %cst_15 = arith.constant dense<0.000000e+00> : vector<8x16xf32>
    %33 = tpu.matmul %32, %19, %cst_15 {dimension_numbers = #tpu.dot_dimension_numbers<[1], [0], [0], [1], [0, 0, 1, 1], [], []>} : vector<8x8xf32>, vector<8x16xf32>, vector<8x16xf32> -> vector<8x16xf32>
    %34 = vector.extract_strided_slice %16 {offsets = [0, 16], sizes = [8, 16], strides = [1, 1]} : vector<16x96xf32> to vector<8x16xf32>
    %35 = vector.extract_strided_slice %16 {offsets = [0, 48], sizes = [8, 16], strides = [1, 1]} : vector<16x96xf32> to vector<8x16xf32>
    %36 = vector.extract_strided_slice %16 {offsets = [0, 80], sizes = [8, 16], strides = [1, 1]} : vector<16x96xf32> to vector<8x16xf32>
    %37 = tpu.transpose %35, [1, 0] : vector<8x16xf32> -> vector<16x8xf32>
    %cst_16 = arith.constant dense<0.000000e+00> : vector<8x8xf32>
    %38 = tpu.matmul %34, %37, %cst_16 {dimension_numbers = #tpu.dot_dimension_numbers<[1], [0], [0], [1], [0, 0, 1, 1], [], []>} : vector<8x16xf32>, vector<16x8xf32>, vector<8x8xf32> -> vector<8x8xf32>
    %cst_17 = arith.constant 0.176776692 : f32
    %39 = vector.broadcast %cst_17 : f32 to vector<8x8xf32>
    %40 = arith.mulf %38, %39 : vector<8x8xf32>
    %cst_18 = arith.constant dense<0xFF800000> : vector<8xf32>
    %41 = vector.multi_reduction <maximumf>, %40, %cst_18 [1] : vector<8x8xf32> to vector<8xf32>
    %42 = vector.shape_cast %41 : vector<8xf32> to vector<8x1xf32>
    %43 = vector.broadcast %42 : vector<8x1xf32> to vector<8x8xf32>
    %44 = arith.subf %40, %43 : vector<8x8xf32>
    %45 = math.exp %44 : vector<8x8xf32>
    %cst_19 = arith.constant dense<0.000000e+00> : vector<8xf32>
    %46 = vector.multi_reduction <add>, %45, %cst_19 [1] : vector<8x8xf32> to vector<8xf32>
    %47 = vector.shape_cast %46 : vector<8xf32> to vector<8x1xf32>
    %48 = vector.broadcast %47 : vector<8x1xf32> to vector<8x8xf32>
    %49 = arith.divf %45, %48 : vector<8x8xf32>
    %cst_20 = arith.constant dense<0.000000e+00> : vector<8x16xf32>
    %50 = tpu.matmul %49, %36, %cst_20 {dimension_numbers = #tpu.dot_dimension_numbers<[1], [0], [0], [1], [0, 0, 1, 1], [], []>} : vector<8x8xf32>, vector<8x16xf32>, vector<8x16xf32> -> vector<8x16xf32>
    %51 = tpu.concatenate %33, %50 in 1 : vector<8x16xf32>, vector<8x16xf32> -> vector<8x32xf32>
    %52 = vector.extract_strided_slice %16 {offsets = [8, 0], sizes = [8, 16], strides = [1, 1]} : vector<16x96xf32> to vector<8x16xf32>
    %53 = vector.extract_strided_slice %16 {offsets = [8, 32], sizes = [8, 16], strides = [1, 1]} : vector<16x96xf32> to vector<8x16xf32>
    %54 = vector.extract_strided_slice %16 {offsets = [8, 64], sizes = [8, 16], strides = [1, 1]} : vector<16x96xf32> to vector<8x16xf32>
    %55 = tpu.transpose %53, [1, 0] : vector<8x16xf32> -> vector<16x8xf32>
    %cst_21 = arith.constant dense<0.000000e+00> : vector<8x8xf32>
    %56 = tpu.matmul %52, %55, %cst_21 {dimension_numbers = #tpu.dot_dimension_numbers<[1], [0], [0], [1], [0, 0, 1, 1], [], []>} : vector<8x16xf32>, vector<16x8xf32>, vector<8x8xf32> -> vector<8x8xf32>
    %cst_22 = arith.constant 0.176776692 : f32
    %57 = vector.broadcast %cst_22 : f32 to vector<8x8xf32>
    %58 = arith.mulf %56, %57 : vector<8x8xf32>
    %cst_23 = arith.constant dense<0xFF800000> : vector<8xf32>
    %59 = vector.multi_reduction <maximumf>, %58, %cst_23 [1] : vector<8x8xf32> to vector<8xf32>
    %60 = vector.shape_cast %59 : vector<8xf32> to vector<8x1xf32>
    %61 = vector.broadcast %60 : vector<8x1xf32> to vector<8x8xf32>
    %62 = arith.subf %58, %61 : vector<8x8xf32>
    %63 = math.exp %62 : vector<8x8xf32>
    %cst_24 = arith.constant dense<0.000000e+00> : vector<8xf32>
    %64 = vector.multi_reduction <add>, %63, %cst_24 [1] : vector<8x8xf32> to vector<8xf32>
    %65 = vector.shape_cast %64 : vector<8xf32> to vector<8x1xf32>
    %66 = vector.broadcast %65 : vector<8x1xf32> to vector<8x8xf32>
    %67 = arith.divf %63, %66 : vector<8x8xf32>
    %cst_25 = arith.constant dense<0.000000e+00> : vector<8x16xf32>
    %68 = tpu.matmul %67, %54, %cst_25 {dimension_numbers = #tpu.dot_dimension_numbers<[1], [0], [0], [1], [0, 0, 1, 1], [], []>} : vector<8x8xf32>, vector<8x16xf32>, vector<8x16xf32> -> vector<8x16xf32>
    %69 = vector.extract_strided_slice %16 {offsets = [8, 16], sizes = [8, 16], strides = [1, 1]} : vector<16x96xf32> to vector<8x16xf32>
    %70 = vector.extract_strided_slice %16 {offsets = [8, 48], sizes = [8, 16], strides = [1, 1]} : vector<16x96xf32> to vector<8x16xf32>
    %71 = vector.extract_strided_slice %16 {offsets = [8, 80], sizes = [8, 16], strides = [1, 1]} : vector<16x96xf32> to vector<8x16xf32>
    %72 = tpu.transpose %70, [1, 0] : vector<8x16xf32> -> vector<16x8xf32>
    %cst_26 = arith.constant dense<0.000000e+00> : vector<8x8xf32>
    %73 = tpu.matmul %69, %72, %cst_26 {dimension_numbers = #tpu.dot_dimension_numbers<[1], [0], [0], [1], [0, 0, 1, 1], [], []>} : vector<8x16xf32>, vector<16x8xf32>, vector<8x8xf32> -> vector<8x8xf32>
    %cst_27 = arith.constant 0.176776692 : f32
    %74 = vector.broadcast %cst_27 : f32 to vector<8x8xf32>
    %75 = arith.mulf %73, %74 : vector<8x8xf32>
    %cst_28 = arith.constant dense<0xFF800000> : vector<8xf32>
    %76 = vector.multi_reduction <maximumf>, %75, %cst_28 [1] : vector<8x8xf32> to vector<8xf32>
    %77 = vector.shape_cast %76 : vector<8xf32> to vector<8x1xf32>
    %78 = vector.broadcast %77 : vector<8x1xf32> to vector<8x8xf32>
    %79 = arith.subf %75, %78 : vector<8x8xf32>
    %80 = math.exp %79 : vector<8x8xf32>
    %cst_29 = arith.constant dense<0.000000e+00> : vector<8xf32>
    %81 = vector.multi_reduction <add>, %80, %cst_29 [1] : vector<8x8xf32> to vector<8xf32>
    %82 = vector.shape_cast %81 : vector<8xf32> to vector<8x1xf32>
    %83 = vector.broadcast %82 : vector<8x1xf32> to vector<8x8xf32>
    %84 = arith.divf %80, %83 : vector<8x8xf32>
    %cst_30 = arith.constant dense<0.000000e+00> : vector<8x16xf32>
    %85 = tpu.matmul %84, %71, %cst_30 {dimension_numbers = #tpu.dot_dimension_numbers<[1], [0], [0], [1], [0, 0, 1, 1], [], []>} : vector<8x8xf32>, vector<8x16xf32>, vector<8x16xf32> -> vector<8x16xf32>
    %86 = tpu.concatenate %68, %85 in 1 : vector<8x16xf32>, vector<8x16xf32> -> vector<8x32xf32>
    %87 = tpu.concatenate %51, %86 in 0 : vector<8x32xf32>, vector<8x32xf32> -> vector<16x32xf32>
    %c0_31 = arith.constant 0 : index
    %c0_32 = arith.constant 0 : index
    %c0_33 = arith.constant 0 : index
    %88 = vector.load %arg4[%c0_31, %c0_32, %c0_33] : memref<1x32x32xf32, #tpu.memory_space<vmem>>, vector<1x32x32xf32>
    %89 = vector.shape_cast %88 : vector<1x32x32xf32> to vector<32x32xf32>
    %cst_34 = arith.constant dense<0.000000e+00> : vector<16x32xf32>
    %90 = tpu.matmul %87, %89, %cst_34 {dimension_numbers = #tpu.dot_dimension_numbers<[1], [0], [0], [1], [0, 0, 1, 1], [], []>} : vector<16x32xf32>, vector<32x32xf32>, vector<16x32xf32> -> vector<16x32xf32>
    %91 = vector.broadcast %6 : vector<1x32xf32> to vector<16x32xf32>
    %92 = arith.addf %90, %91 : vector<16x32xf32>
    %93 = arith.addf %3, %92 : vector<16x32xf32>
    %cst_35 = arith.constant dense<0.000000e+00> : vector<16xf32>
    %94 = vector.multi_reduction <add>, %93, %cst_35 [1] : vector<16x32xf32> to vector<16xf32>
    %95 = vector.shape_cast %94 : vector<16xf32> to vector<16x1xf32>
    %cst_36 = arith.constant 3.200000e+01 : f32
    %96 = vector.broadcast %cst_36 : f32 to vector<16x1xf32>
    %97 = arith.divf %95, %96 : vector<16x1xf32>
    %98 = vector.broadcast %97 : vector<16x1xf32> to vector<16x32xf32>
    %99 = arith.subf %93, %98 : vector<16x32xf32>
    %100 = arith.mulf %99, %99 : vector<16x32xf32>
    %cst_37 = arith.constant dense<0.000000e+00> : vector<16xf32>
    %101 = vector.multi_reduction <add>, %100, %cst_37 [1] : vector<16x32xf32> to vector<16xf32>
    %102 = vector.shape_cast %101 : vector<16xf32> to vector<16x1xf32>
    %cst_38 = arith.constant 3.200000e+01 : f32
    %103 = vector.broadcast %cst_38 : f32 to vector<16x1xf32>
    %104 = arith.divf %102, %103 : vector<16x1xf32>
    %cst_39 = arith.constant 9.99999974E-6 : f32
    %105 = vector.broadcast %cst_39 : f32 to vector<16x1xf32>
    %106 = arith.addf %104, %105 : vector<16x1xf32>
    %107 = math.rsqrt %106 : vector<16x1xf32>
    %108 = vector.broadcast %107 : vector<16x1xf32> to vector<16x32xf32>
    %109 = arith.mulf %99, %108 : vector<16x32xf32>
    %110 = vector.broadcast %7 : vector<1x32xf32> to vector<16x32xf32>
    %111 = arith.mulf %109, %110 : vector<16x32xf32>
    %112 = vector.broadcast %8 : vector<1x32xf32> to vector<16x32xf32>
    %113 = arith.addf %111, %112 : vector<16x32xf32>
    %c0_40 = arith.constant 0 : index
    %c0_41 = arith.constant 0 : index
    %c0_42 = arith.constant 0 : index
    %114 = vector.load %arg5[%c0_40, %c0_41, %c0_42] : memref<1x32x64xf32, #tpu.memory_space<vmem>>, vector<1x32x64xf32>
    %115 = vector.shape_cast %114 : vector<1x32x64xf32> to vector<32x64xf32>
    %cst_43 = arith.constant dense<0.000000e+00> : vector<16x64xf32>
    %116 = tpu.matmul %113, %115, %cst_43 {dimension_numbers = #tpu.dot_dimension_numbers<[1], [0], [0], [1], [0, 0, 1, 1], [], []>} : vector<16x32xf32>, vector<32x64xf32>, vector<16x64xf32> -> vector<16x64xf32>
    %117 = vector.broadcast %13 : vector<1x64xf32> to vector<16x64xf32>
    %118 = arith.addf %116, %117 : vector<16x64xf32>
    %cst_44 = arith.constant 0.000000e+00 : f32
    %119 = vector.broadcast %cst_44 : f32 to vector<16x64xf32>
    %120 = arith.maximumf %118, %119 : vector<16x64xf32>
    %c0_45 = arith.constant 0 : index
    %c0_46 = arith.constant 0 : index
    %c0_47 = arith.constant 0 : index
    %121 = vector.load %arg7[%c0_45, %c0_46, %c0_47] : memref<1x64x32xf32, #tpu.memory_space<vmem>>, vector<1x64x32xf32>
    %122 = vector.shape_cast %121 : vector<1x64x32xf32> to vector<64x32xf32>
    %cst_48 = arith.constant dense<0.000000e+00> : vector<16x32xf32>
    %123 = tpu.matmul %120, %122, %cst_48 {dimension_numbers = #tpu.dot_dimension_numbers<[1], [0], [0], [1], [0, 0, 1, 1], [], []>} : vector<16x64xf32>, vector<64x32xf32>, vector<16x32xf32> -> vector<16x32xf32>
    %124 = vector.broadcast %9 : vector<1x32xf32> to vector<16x32xf32>
    %125 = arith.addf %123, %124 : vector<16x32xf32>
    %126 = arith.addf %113, %125 : vector<16x32xf32>
    %cst_49 = arith.constant dense<0.000000e+00> : vector<16xf32>
    %127 = vector.multi_reduction <add>, %126, %cst_49 [1] : vector<16x32xf32> to vector<16xf32>
    %128 = vector.shape_cast %127 : vector<16xf32> to vector<16x1xf32>
    %cst_50 = arith.constant 3.200000e+01 : f32
    %129 = vector.broadcast %cst_50 : f32 to vector<16x1xf32>
    %130 = arith.divf %128, %129 : vector<16x1xf32>
    %131 = vector.broadcast %130 : vector<16x1xf32> to vector<16x32xf32>
    %132 = arith.subf %126, %131 : vector<16x32xf32>
    %133 = arith.mulf %132, %132 : vector<16x32xf32>
    %cst_51 = arith.constant dense<0.000000e+00> : vector<16xf32>
    %134 = vector.multi_reduction <add>, %133, %cst_51 [1] : vector<16x32xf32> to vector<16xf32>
    %135 = vector.shape_cast %134 : vector<16xf32> to vector<16x1xf32>
    %cst_52 = arith.constant 3.200000e+01 : f32
    %136 = vector.broadcast %cst_52 : f32 to vector<16x1xf32>
    %137 = arith.divf %135, %136 : vector<16x1xf32>
    %cst_53 = arith.constant 9.99999974E-6 : f32
    %138 = vector.broadcast %cst_53 : f32 to vector<16x1xf32>
    %139 = arith.addf %137, %138 : vector<16x1xf32>
    %140 = math.rsqrt %139 : vector<16x1xf32>
    %141 = vector.broadcast %140 : vector<16x1xf32> to vector<16x32xf32>
    %142 = arith.mulf %132, %141 : vector<16x32xf32>
    %143 = vector.broadcast %10 : vector<1x32xf32> to vector<16x32xf32>
    %144 = arith.mulf %142, %143 : vector<16x32xf32>
    %145 = vector.broadcast %11 : vector<1x32xf32> to vector<16x32xf32>
    %146 = arith.addf %144, %145 : vector<16x32xf32>
    %c0_54 = arith.constant 0 : index
    %c0_55 = arith.constant 0 : index
    %147 = vector.load %arg13[%c0_54, %c0_55] : memref<16x32xf32, #tpu.memory_space<vmem>>, vector<16x32xf32>
    tpu.vector_store %arg13[%c0_54, %c0_55], %146 {strides = array<i32>} : memref<16x32xf32, #tpu.memory_space<vmem>>, vector<16x32xf32>,
    %c1_i32 = arith.constant 1 : i32
    %148 = arith.cmpi eq, %arg0, %c1_i32 : i32
    %149 = arith.extui %148 : i1 to i32
    %c0_i32_56 = arith.constant 0 : i32
    %150 = arith.cmpi ne, %149, %c0_i32_56 : i32
    scf.if %150 {
      %151 = tpu.concatenate %32, %49, %67, %84 in 0 : vector<8x8xf32>, vector<8x8xf32>, vector<8x8xf32>, vector<8x8xf32> -> vector<32x8xf32>
      %c0_57 = arith.constant 0 : index
      %c0_58 = arith.constant 0 : index
      %152 = vector.load %arg12[%c0_57, %c0_58] : memref<32x8xf32, #tpu.memory_space<vmem>>, vector<32x8xf32>
      tpu.vector_store %arg12[%c0_57, %c0_58], %151 {strides = array<i32>} : memref<32x8xf32, #tpu.memory_space<vmem>>, vector<32x8xf32>,
      %cst_59 = arith.constant 0.000000e+00 : f32
      %153 = vector.broadcast %cst_59 : f32 to vector<2x4xf32>
      %154 = vector.extract_strided_slice %146 {offsets = [0, 0], sizes = [1, 32], strides = [1, 1]} : vector<16x32xf32> to vector<1x32xf32>
      %155 = vector.extract_strided_slice %146 {offsets = [8, 0], sizes = [1, 32], strides = [1, 1]} : vector<16x32xf32> to vector<1x32xf32>
      %156 = tpu.concatenate %154, %155 in 0 : vector<1x32xf32>, vector<1x32xf32> -> vector<2x32xf32>
      %c0_60 = arith.constant 0 : index
      %c0_61 = arith.constant 0 : index
      %c0_62 = arith.constant 0 : index
      %157 = vector.load %arg9[%c0_60, %c0_61, %c0_62] : memref<8x32x4xf32, #tpu.memory_space<vmem>>, vector<1x32x4xf32>
      %158 = vector.shape_cast %157 : vector<1x32x4xf32> to vector<32x4xf32>
      %cst_63 = arith.constant dense<0.000000e+00> : vector<2x4xf32>
      %159 = tpu.matmul %156, %158, %cst_63 {dimension_numbers = #tpu.dot_dimension_numbers<[1], [0], [0], [1], [0, 0, 1, 1], [], []>} : vector<2x32xf32>, vector<32x4xf32>, vector<2x4xf32> -> vector<2x4xf32>
      %160 = arith.addf %153, %159 : vector<2x4xf32>
      %161 = vector.extract_strided_slice %146 {offsets = [1, 0], sizes = [1, 32], strides = [1, 1]} : vector<16x32xf32> to vector<1x32xf32>
      %162 = vector.extract_strided_slice %146 {offsets = [9, 0], sizes = [1, 32], strides = [1, 1]} : vector<16x32xf32> to vector<1x32xf32>
      %163 = tpu.concatenate %161, %162 in 0 : vector<1x32xf32>, vector<1x32xf32> -> vector<2x32xf32>
      %c1 = arith.constant 1 : index
      %c0_64 = arith.constant 0 : index
      %c0_65 = arith.constant 0 : index
      %164 = vector.load %arg9[%c1, %c0_64, %c0_65] : memref<8x32x4xf32, #tpu.memory_space<vmem>>, vector<1x32x4xf32>
      %165 = vector.shape_cast %164 : vector<1x32x4xf32> to vector<32x4xf32>
      %cst_66 = arith.constant dense<0.000000e+00> : vector<2x4xf32>
      %166 = tpu.matmul %163, %165, %cst_66 {dimension_numbers = #tpu.dot_dimension_numbers<[1], [0], [0], [1], [0, 0, 1, 1], [], []>} : vector<2x32xf32>, vector<32x4xf32>, vector<2x4xf32> -> vector<2x4xf32>
      %167 = arith.addf %160, %166 : vector<2x4xf32>
      %168 = vector.extract_strided_slice %146 {offsets = [2, 0], sizes = [1, 32], strides = [1, 1]} : vector<16x32xf32> to vector<1x32xf32>
      %169 = vector.extract_strided_slice %146 {offsets = [10, 0], sizes = [1, 32], strides = [1, 1]} : vector<16x32xf32> to vector<1x32xf32>
      %170 = tpu.concatenate %168, %169 in 0 : vector<1x32xf32>, vector<1x32xf32> -> vector<2x32xf32>
      %c2 = arith.constant 2 : index
      %c0_67 = arith.constant 0 : index
      %c0_68 = arith.constant 0 : index
      %171 = vector.load %arg9[%c2, %c0_67, %c0_68] : memref<8x32x4xf32, #tpu.memory_space<vmem>>, vector<1x32x4xf32>
      %172 = vector.shape_cast %171 : vector<1x32x4xf32> to vector<32x4xf32>
      %cst_69 = arith.constant dense<0.000000e+00> : vector<2x4xf32>
      %173 = tpu.matmul %170, %172, %cst_69 {dimension_numbers = #tpu.dot_dimension_numbers<[1], [0], [0], [1], [0, 0, 1, 1], [], []>} : vector<2x32xf32>, vector<32x4xf32>, vector<2x4xf32> -> vector<2x4xf32>
      %174 = arith.addf %167, %173 : vector<2x4xf32>
      %175 = vector.extract_strided_slice %146 {offsets = [3, 0], sizes = [1, 32], strides = [1, 1]} : vector<16x32xf32> to vector<1x32xf32>
      %176 = vector.extract_strided_slice %146 {offsets = [11, 0], sizes = [1, 32], strides = [1, 1]} : vector<16x32xf32> to vector<1x32xf32>
      %177 = tpu.concatenate %175, %176 in 0 : vector<1x32xf32>, vector<1x32xf32> -> vector<2x32xf32>
      %c3 = arith.constant 3 : index
      %c0_70 = arith.constant 0 : index
      %c0_71 = arith.constant 0 : index
      %178 = vector.load %arg9[%c3, %c0_70, %c0_71] : memref<8x32x4xf32, #tpu.memory_space<vmem>>, vector<1x32x4xf32>
      %179 = vector.shape_cast %178 : vector<1x32x4xf32> to vector<32x4xf32>
      %cst_72 = arith.constant dense<0.000000e+00> : vector<2x4xf32>
      %180 = tpu.matmul %177, %179, %cst_72 {dimension_numbers = #tpu.dot_dimension_numbers<[1], [0], [0], [1], [0, 0, 1, 1], [], []>} : vector<2x32xf32>, vector<32x4xf32>, vector<2x4xf32> -> vector<2x4xf32>
      %181 = arith.addf %174, %180 : vector<2x4xf32>
      %182 = vector.extract_strided_slice %146 {offsets = [4, 0], sizes = [1, 32], strides = [1, 1]} : vector<16x32xf32> to vector<1x32xf32>
      %183 = vector.extract_strided_slice %146 {offsets = [12, 0], sizes = [1, 32], strides = [1, 1]} : vector<16x32xf32> to vector<1x32xf32>
      %184 = tpu.concatenate %182, %183 in 0 : vector<1x32xf32>, vector<1x32xf32> -> vector<2x32xf32>
      %c4 = arith.constant 4 : index
      %c0_73 = arith.constant 0 : index
      %c0_74 = arith.constant 0 : index
      %185 = vector.load %arg9[%c4, %c0_73, %c0_74] : memref<8x32x4xf32, #tpu.memory_space<vmem>>, vector<1x32x4xf32>
      %186 = vector.shape_cast %185 : vector<1x32x4xf32> to vector<32x4xf32>
      %cst_75 = arith.constant dense<0.000000e+00> : vector<2x4xf32>
      %187 = tpu.matmul %184, %186, %cst_75 {dimension_numbers = #tpu.dot_dimension_numbers<[1], [0], [0], [1], [0, 0, 1, 1], [], []>} : vector<2x32xf32>, vector<32x4xf32>, vector<2x4xf32> -> vector<2x4xf32>
      %188 = arith.addf %181, %187 : vector<2x4xf32>
      %189 = vector.extract_strided_slice %146 {offsets = [5, 0], sizes = [1, 32], strides = [1, 1]} : vector<16x32xf32> to vector<1x32xf32>
      %190 = vector.extract_strided_slice %146 {offsets = [13, 0], sizes = [1, 32], strides = [1, 1]} : vector<16x32xf32> to vector<1x32xf32>
      %191 = tpu.concatenate %189, %190 in 0 : vector<1x32xf32>, vector<1x32xf32> -> vector<2x32xf32>
      %c5 = arith.constant 5 : index
      %c0_76 = arith.constant 0 : index
      %c0_77 = arith.constant 0 : index
      %192 = vector.load %arg9[%c5, %c0_76, %c0_77] : memref<8x32x4xf32, #tpu.memory_space<vmem>>, vector<1x32x4xf32>
      %193 = vector.shape_cast %192 : vector<1x32x4xf32> to vector<32x4xf32>
      %cst_78 = arith.constant dense<0.000000e+00> : vector<2x4xf32>
      %194 = tpu.matmul %191, %193, %cst_78 {dimension_numbers = #tpu.dot_dimension_numbers<[1], [0], [0], [1], [0, 0, 1, 1], [], []>} : vector<2x32xf32>, vector<32x4xf32>, vector<2x4xf32> -> vector<2x4xf32>
      %195 = arith.addf %188, %194 : vector<2x4xf32>
      %196 = vector.extract_strided_slice %146 {offsets = [6, 0], sizes = [1, 32], strides = [1, 1]} : vector<16x32xf32> to vector<1x32xf32>
      %197 = vector.extract_strided_slice %146 {offsets = [14, 0], sizes = [1, 32], strides = [1, 1]} : vector<16x32xf32> to vector<1x32xf32>
      %198 = tpu.concatenate %196, %197 in 0 : vector<1x32xf32>, vector<1x32xf32> -> vector<2x32xf32>
      %c6 = arith.constant 6 : index
      %c0_79 = arith.constant 0 : index
      %c0_80 = arith.constant 0 : index
      %199 = vector.load %arg9[%c6, %c0_79, %c0_80] : memref<8x32x4xf32, #tpu.memory_space<vmem>>, vector<1x32x4xf32>
      %200 = vector.shape_cast %199 : vector<1x32x4xf32> to vector<32x4xf32>
      %cst_81 = arith.constant dense<0.000000e+00> : vector<2x4xf32>
      %201 = tpu.matmul %198, %200, %cst_81 {dimension_numbers = #tpu.dot_dimension_numbers<[1], [0], [0], [1], [0, 0, 1, 1], [], []>} : vector<2x32xf32>, vector<32x4xf32>, vector<2x4xf32> -> vector<2x4xf32>
      %202 = arith.addf %195, %201 : vector<2x4xf32>
      %203 = vector.extract_strided_slice %146 {offsets = [7, 0], sizes = [1, 32], strides = [1, 1]} : vector<16x32xf32> to vector<1x32xf32>
      %204 = vector.extract_strided_slice %146 {offsets = [15, 0], sizes = [1, 32], strides = [1, 1]} : vector<16x32xf32> to vector<1x32xf32>
      %205 = tpu.concatenate %203, %204 in 0 : vector<1x32xf32>, vector<1x32xf32> -> vector<2x32xf32>
      %c7 = arith.constant 7 : index
      %c0_82 = arith.constant 0 : index
      %c0_83 = arith.constant 0 : index
      %206 = vector.load %arg9[%c7, %c0_82, %c0_83] : memref<8x32x4xf32, #tpu.memory_space<vmem>>, vector<1x32x4xf32>
      %207 = vector.shape_cast %206 : vector<1x32x4xf32> to vector<32x4xf32>
      %cst_84 = arith.constant dense<0.000000e+00> : vector<2x4xf32>
      %208 = tpu.matmul %205, %207, %cst_84 {dimension_numbers = #tpu.dot_dimension_numbers<[1], [0], [0], [1], [0, 0, 1, 1], [], []>} : vector<2x32xf32>, vector<32x4xf32>, vector<2x4xf32> -> vector<2x4xf32>
      %209 = arith.addf %202, %208 : vector<2x4xf32>
      %c0_85 = arith.constant 0 : index
      %c0_86 = arith.constant 0 : index
      %210 = vector.load %arg10[%c0_85, %c0_86] : memref<1x4xf32, #tpu.memory_space<vmem>>, vector<1x4xf32>
      %211 = vector.broadcast %210 : vector<1x4xf32> to vector<2x4xf32>
      %212 = arith.addf %209, %211 : vector<2x4xf32>
      %c0_87 = arith.constant 0 : index
      %c0_88 = arith.constant 0 : index
      %213 = vector.load %arg11[%c0_87, %c0_88] : memref<2x4xf32, #tpu.memory_space<vmem>>, vector<2x4xf32>
      tpu.vector_store %arg11[%c0_87, %c0_88], %212 {strides = array<i32>} : memref<2x4xf32, #tpu.memory_space<vmem>>, vector<2x4xf32>,
    } else {
    }
    return
  }
  func.func @transform_0(%arg0: i32, %arg1: memref<16xi32, #tpu.memory_space<smem>>) -> (i32, i32) {
    %c0_i32 = arith.constant 0 : i32
    %c0_i32_0 = arith.constant 0 : i32
    %c0_i32_1 = arith.constant 0 : i32
    return %c0_i32, %c0_i32_0 : i32, i32
  }
  func.func @transform_1(%arg0: i32, %arg1: memref<16xi32, #tpu.memory_space<smem>>) -> (i32, i32, i32) {
    %c0_i32 = arith.constant 0 : i32
    %c0_i32_0 = arith.constant 0 : i32
    %c0_i32_1 = arith.constant 0 : i32
    return %arg0, %c0_i32, %c0_i32_0 : i32, i32, i32
  }
  func.func @transform_2(%arg0: i32, %arg1: memref<16xi32, #tpu.memory_space<smem>>) -> (i32, i32, i32) {
    %c0_i32 = arith.constant 0 : i32
    %c0_i32_0 = arith.constant 0 : i32
    %c0_i32_1 = arith.constant 0 : i32
    return %arg0, %c0_i32, %c0_i32_0 : i32, i32, i32
  }
  func.func @transform_3(%arg0: i32, %arg1: memref<16xi32, #tpu.memory_space<smem>>) -> (i32, i32, i32) {
    %c0_i32 = arith.constant 0 : i32
    %c0_i32_0 = arith.constant 0 : i32
    %c0_i32_1 = arith.constant 0 : i32
    return %arg0, %c0_i32, %c0_i32_0 : i32, i32, i32
  }
  func.func @transform_4(%arg0: i32, %arg1: memref<16xi32, #tpu.memory_space<smem>>) -> (i32, i32, i32) {
    %c0_i32 = arith.constant 0 : i32
    %c0_i32_0 = arith.constant 0 : i32
    %c0_i32_1 = arith.constant 0 : i32
    return %arg0, %c0_i32, %c0_i32_0 : i32, i32, i32
  }
  func.func @transform_5(%arg0: i32, %arg1: memref<16xi32, #tpu.memory_space<smem>>) -> (i32, i32, i32) {
    %c0_i32 = arith.constant 0 : i32
    %c0_i32_0 = arith.constant 0 : i32
    %c0_i32_1 = arith.constant 0 : i32
    return %arg0, %c0_i32, %c0_i32_0 : i32, i32, i32
  }
  func.func @transform_6(%arg0: i32, %arg1: memref<16xi32, #tpu.memory_space<smem>>) -> (i32, i32, i32) {
    %c0_i32 = arith.constant 0 : i32
    %c0_i32_0 = arith.constant 0 : i32
    %c0_i32_1 = arith.constant 0 : i32
    return %arg0, %c0_i32, %c0_i32_0 : i32, i32, i32
  }
  func.func @transform_7(%arg0: i32, %arg1: memref<16xi32, #tpu.memory_space<smem>>) -> (i32, i32, i32) {
    %c0_i32 = arith.constant 0 : i32
    %c0_i32_0 = arith.constant 0 : i32
    %c0_i32_1 = arith.constant 0 : i32
    %c0_i32_2 = arith.constant 0 : i32
    return %c0_i32, %c0_i32_0, %c0_i32_1 : i32, i32, i32
  }
  func.func @transform_8(%arg0: i32, %arg1: memref<16xi32, #tpu.memory_space<smem>>) -> (i32, i32) {
    %c0_i32 = arith.constant 0 : i32
    %c0_i32_0 = arith.constant 0 : i32
    %c0_i32_1 = arith.constant 0 : i32
    return %c0_i32, %c0_i32_0 : i32, i32
  }
  func.func @transform_9(%arg0: i32, %arg1: memref<16xi32, #tpu.memory_space<smem>>) -> (i32, i32) {
    %c0_i32 = arith.constant 0 : i32
    %c0_i32_0 = arith.constant 0 : i32
    %c0_i32_1 = arith.constant 0 : i32
    return %c0_i32, %c0_i32_0 : i32, i32
  }
  func.func @transform_10(%arg0: i32, %arg1: memref<16xi32, #tpu.memory_space<smem>>) -> (i32, i32) {
    %c0_i32 = arith.constant 0 : i32
    %c0_i32_0 = arith.constant 0 : i32
    %c0_i32_1 = arith.constant 0 : i32
    return %c0_i32, %c0_i32_0 : i32, i32
  }
}

</mosaic_0001>

<bundles_post_ra>
// kernel: tpu_custom_call.1
= control target key start
LH: loop header
LB: loop body
LE: loop exit
PB: predicated region body
PF: predicated region fallthrough
CT: control target
= control target key end

     0   :  { %s3553_s0 = inlined_call_operand.vmem [shape: s32[16], index: 0, kind: input, shape index: {}]   ;;  %s3554_s1 = inlined_call_operand.vmem [shape: f32[50,32], index: 1, kind: input, shape index: {}]   ;;  %s3555_s2 = inlined_call_operand.vmem [shape: f32[2,32,96], index: 2, kind: input, shape index: {}]   ;;  %s3556_s3 = inlined_call_operand.vmem [shape: f32[2,32,32], index: 3, kind: input, shape index: {}]   ;;  %s3557_s4 = inlined_call_operand.vmem [shape: f32[2,32,64], index: 4, kind: input, shape index: {}]   ;;  %s3558_s5 = inlined_call_operand.vmem [shape: f32[2,1,64], index: 5, kind: input, shape index: {}]   ;;  %s3559_s6 = inlined_call_operand.vmem [shape: f32[2,64,32], index: 6, kind: input, shape index: {}]   ;;  %s3560_s7 = inlined_call_operand.vmem [shape: f32[2,6,32], index: 7, kind: input, shape index: {}]   ;;  %s3561_s8 = inlined_call_operand.vmem [shape: f32[8,32,4], index: 8, kind: input, shape index: {}]   ;;  %s3562_s9 = inlined_call_operand.vmem [shape: f32[1,4], index: 9, kind: input, shape index: {}]   ;;  %s3563_s10 = inlined_call_operand.hbm [shape: f32[2,4], index: 10, kind: output, shape index: {0}]   ;;  %s3564_s11 = inlined_call_operand.vmem [shape: f32[32,8], index: 11, kind: output, shape index: {1}]  }
   0x1   :  { %3571 = sst [smem:[#allocation11_spill]] %s3555_s2  ;;  %s17_s19 = sshll.u32 %s3553_s0, 4  ;;  %s18_s19 = int_to_ptr.vmem [resolvable:$true] %s17_s19 }
   0x2   :  { %3572 = sst [smem:[#allocation12_spill]] %s3556_s3  ;;  %s2944_s20 = scalar_lea.vmem %s18_s19, 16 }
   0x3   :  { %3573 = sst [smem:[#allocation13_spill]] %s3557_s4  ;;  %p2945_p0 = scmp.ne.s32.totalorder %s18_s19, %s2944_s20 }
   0x4   :  { %3574 = sst [smem:[#allocation14_spill]] %s3558_s5  ;;  %p2949_p1 = scmp.lt.s32.totalorder %s18_s19, %s18_s19 }
   0x5   :  { %3575 = sst [smem:[#allocation15_spill]] %s3559_s6  ;;  %p2950_p2 = scmp.lt.s32.totalorder %s2944_s20, %s2944_s20 }
   0x6   :  { %3576 = sst [smem:[#allocation16_spill]] %s3560_s7 }
   0x7   :  { %3577 = sst [smem:[#allocation17_spill]] %s3561_s8  ;;  %p2951_p3 = por %p2950_p2, %p2949_p1 }
   0x8   :  { %3578 = sst [smem:[#allocation18_spill]] %s3562_s9 }
   0x9   :  { %3579 = sst [smem:[#allocation19_spill]] %s3563_s10  ;;  %p2952_p4 = pnand %p2951_p3, %p2945_p0 }
   0xa   :  { %3580 = sst [smem:[#allocation20_spill]] %s3564_s11 }
   0xb   :  { %2955 = shalt.err (!%p2952_p4)  }
   0xc   :  { %s2996_s21 = smov [#allocation4]  }
   0xd   :  { %20 = dma.vmem_to_smem %s18_s19, 16, %s2996_s21, [#allocation3] }
   0xe   :  { %2986 = dma.done.wait [#allocation3], 16 }
   0xf   :  { %2987 = vsyncadd [#allocation3], 4294967280 }
  0x10   :  { %22 = sfence }
  0x11   :  { %23 = vsyncpa [#allocation6], 0  ;;  %s3072_s22 = smov 0  }
  0x12 LB: > { %3581 = sst [smem:[#allocation9_spill]] %s2994_s22  ;;  %s3078_s0 = sadd.s32 4294967295, %s2994_s22   ;;  %s2994_s22 = sphi %s3072_s22, %s29_s22  }
  0x13   : > { %3582 = sst [smem:[#allocation10_spill]] %s3078_s0  ;;  %p2448_p5 = scmp.ge.s32.totalorder %s2994_s22, 1 }
  0x14   : > { %p360_p6 = scmp.lt.s32.totalorder %s2994_s22, 3 }
  0x16   : > { %p361_p7 = pnand %p2448_p5, %p360_p6 }
  0x17   : > { %p415_p8 = scmp.lt.s32.totalorder (!%p361_p7), %s3078_s0, 1  ;;  %s3584_s2 = sld [smem:[#allocation11_spill]] (!%p361_p7) }
  0x18   : > { %364 = sbr.rel (%p361_p7) target bundleno = 2832 (0xb10), region = 56  ;;  %s3585_s3 = sld [smem:[#allocation12_spill]] (!%p361_p7) }
  0x19   : > { %s3586_s4 = sld [smem:[#allocation13_spill]] (!%p361_p7)  ;;  %s3587_s6 = sld [smem:[#allocation15_spill]] (!%p361_p7) }
  0x1a   : > { %s3588_s7 = sld [smem:[#allocation16_spill]] (!%p361_p7)  ;;  %p2458_p9 = scmp.ne.s32.totalorder (!%p361_p7), %s3078_s0, 0 }
  0x1f   : > { %s3084_s23 = scalar_select %p415_p8, %s3078_s0, 1 }
  0x20   : > { %445 = sbr.rel (%p2458_p9) target bundleno = 60 (0x3c), region = 60  ;;  %s446_s12 = sld [smem:[#allocation4]] (!%p2458_p9)  ;;  %vm449_vm0 = vcmask (!%p2458_p9), 253952  }
  0x21   : > { %s2537_s24 = sshll.u32 %s3084_s23, 5  ;;  %s2540_s18 = sshll.u32 %s3084_s23, 6 }
  0x22   : > { %s3094_s30 = scalar_lea.vmem %s3584_s2, %s2537_s24  ;;  %s3099_s14 = scalar_lea.vmem %s3585_s3, %s2537_s24 }
  0x23   : > { %s3104_s17 = scalar_lea.vmem %s3586_s4, %s2537_s24  ;;  %s3110_s21 = scalar_lea.vmem %s3587_s6, %s2540_s18 }
  0x24   : > { %s2457_s25 = sshll.u32 %s3084_s23, 3  ;;  %s2459_s13 = sld [smem:[#allocation4 + $0x1]] (!%p2458_p9) }
  0x25   : > { %s3116_s29 = scalar_lea.vmem %s3588_s7, %s2457_s25  ;;  %s2460_s15 = sld [smem:[#allocation4 + $0x2]] (!%p2458_p9) }
  0x26   : > { %s2461_s24 = sld [smem:[#allocation4 + $0x3]] (!%p2458_p9)  ;;  %s2462_s16 = sld [smem:[#allocation4 + $0x4]] (!%p2458_p9) }
  0x27   : > { %s2463_s27 = sld [smem:[#allocation4 + $0x5]]  ;;  %s2464_s2 = sld [smem:[#allocation4 + $0x6]] }
  0x28   : > { %s2465_s3 = sld [smem:[#allocation4 + $0x7]]  ;;  %s3119_s19 = sld [smem:[#allocation4 + $0x8]] }
  0x29   : > { %s3121_s18 = sld [smem:[#allocation4 + $0x9]]  ;;  %s3123_s20 = sld [smem:[#allocation4 + $0xa]] }
  0x2a   : > { %s3125_s25 = sld [smem:[#allocation4 + $0xb]]  ;;  %s447_s4 = scalar_lea.vmem %s3554_s1, %s446_s12 }
  0x2b   : > { %s452_s22 = scalar_lea.vmem %s3554_s1, %s2459_s13  ;;  %v448_v0 = vld [vmem:[%s447_s4] sm:$0x1]  ;;  %s456_s8 = scalar_lea.vmem %s3554_s1, %s2460_s15 }
  0x2c   : > { %v453_v1 = vld [vmem:[%s452_s22] sm:$0x1]  ;;  %s460_s5 = scalar_lea.vmem %s3554_s1, %s2461_s24  ;;  %450 = vst.msk [vmem:[#allocation2] sm:$0x1] %vm449_vm0, %v448_v0  ;;  %s464_s4 = scalar_lea.vmem %s3554_s1, %s2462_s16 }
  0x2d   : > { %454 = vst.msk [vmem:[#allocation2 + $0x1] sm:$0x1] %vm449_vm0, %v453_v1  ;;  %v457_v2 = vld [vmem:[%s456_s8] sm:$0x1]  ;;  %s468_s9 = scalar_lea.vmem %s3554_s1, %s2463_s27  ;;  %s2472_s12 = sld [smem:[#allocation4 + $0xe]] }
  0x2e   : > { %v461_v3 = vld [vmem:[%s460_s5] sm:$0x1]  ;;  %458 = vst.msk [vmem:[#allocation2 + $0x2] sm:$0x1] %vm449_vm0, %v457_v2  ;;  %s472_s5 = scalar_lea.vmem %s3554_s1, %s2464_s2  ;;  %s476_s13 = scalar_lea.vmem %s3554_s1, %s2465_s3 }
  0x2f   : > { %462 = vst.msk [vmem:[#allocation2 + $0x3] sm:$0x1] %vm449_vm0, %v461_v3  ;;  %v465_v4 = vld [vmem:[%s464_s4] sm:$0x1]  ;;  %s480_s24 = scalar_lea.vmem %s3554_s1, %s3119_s19  ;;  %s484_s28 = scalar_lea.vmem %s3554_s1, %s3121_s18 }
  0x30   : > { %v469_v5 = vld [vmem:[%s468_s9] sm:$0x1]  ;;  %466 = vst.msk [vmem:[#allocation2 + $0x4] sm:$0x1] %vm449_vm0, %v465_v4  ;;  %s488_s6 = scalar_lea.vmem %s3554_s1, %s3123_s20  ;;  %s492_s22 = scalar_lea.vmem %s3554_s1, %s3125_s25 }
  0x31   : > { %470 = vst.msk [vmem:[#allocation2 + $0x5] sm:$0x1] %vm449_vm0, %v469_v5  ;;  %v473_v6 = vld [vmem:[%s472_s5] sm:$0x1]  ;;  %s2470_s19 = sld [smem:[#allocation4 + $0xc]]  ;;  %s2471_s18 = sld [smem:[#allocation4 + $0xd]] }
  0x32   : > { %v477_v7 = vld [vmem:[%s476_s13] sm:$0x1]  ;;  %474 = vst.msk [vmem:[#allocation2 + $0x6] sm:$0x1] %vm449_vm0, %v473_v6  ;;  %s2473_s9 = sld [smem:[#allocation4 + $0xf]] }
  0x33   : > { %478 = vst.msk [vmem:[#allocation2 + $0x7] sm:$0x1] %vm449_vm0, %v477_v7  ;;  %v481_v8 = vld [vmem:[%s480_s24] sm:$0x1]  ;;  %s504_s27 = scalar_lea.vmem %s3554_s1, %s2472_s12 }
  0x34   : > { %v485_v9 = vld [vmem:[%s484_s28] sm:$0x1]  ;;  %482 = vst.msk [vmem:[#allocation2 + $0x8] sm:$0x1] %vm449_vm0, %v481_v8 }
  0x35   : > { %486 = vst.msk [vmem:[#allocation2 + $0x9] sm:$0x1] %vm449_vm0, %v485_v9  ;;  %v489_v10 = vld [vmem:[%s488_s6] sm:$0x1] }
  0x36   : > { %v493_v11 = vld [vmem:[%s492_s22] sm:$0x1]  ;;  %490 = vst.msk [vmem:[#allocation2 + $0xa] sm:$0x1] %vm449_vm0, %v489_v10 }
  0x37   : > { %494 = vst.msk [vmem:[#allocation2 + $0xb] sm:$0x1] %vm449_vm0, %v493_v11  ;;  %s496_s11 = scalar_lea.vmem %s3554_s1, %s2470_s19  ;;  %s500_s8 = scalar_lea.vmem %s3554_s1, %s2471_s18  ;;  %v505_v14 = vld [vmem:[%s504_s27] sm:$0x1] }
  0x38   : > { %v497_v12 = vld [vmem:[%s496_s11] sm:$0x1]  ;;  %s508_s16 = scalar_lea.vmem %s3554_s1, %s2473_s9  ;;  %506 = vst.msk [vmem:[#allocation2 + $0xe] sm:$0x1] %vm449_vm0, %v505_v14 }
  0x39   : > { %498 = vst.msk [vmem:[#allocation2 + $0xc] sm:$0x1] %vm449_vm0, %v497_v12  ;;  %v501_v13 = vld [vmem:[%s500_s8] sm:$0x1] }
  0x3a   : > { %502 = vst.msk [vmem:[#allocation2 + $0xd] sm:$0x1] %vm449_vm0, %v501_v13  ;;  %v509_v15 = vld [vmem:[%s508_s16] sm:$0x1] }
  0x3b   : > { %510 = vst.msk [vmem:[#allocation2 + $0xf] sm:$0x1] %vm449_vm0, %v509_v15 }
  0x3c PF: > { %v515_v16 = vld [vmem:[%s3094_s30] sm:$0xff]  ;;  %v516_v17 = vld [vmem:[%s3094_s30 + $0x8] sm:$0xff]  ;;  %v517_v18 = vld [vmem:[%s3094_s30 + $0x10] sm:$0xff]  ;;  %vm519_vm1 = vcmask 261120   ;;  %v2997_v24 = vmov 0.0   ;;  %vm2998_vm2 = vmmov 0  }
  0x3d   : > { %v2805_v19 = vpack.c.bf16 %v516_v17, %v515_v16  ;;  %v518_v20 = vld [vmem:[%s3094_s30 + $0x18] sm:$0xff]  ;;  %v3199_v21 = vld [vmem:[#allocation2] sm:$0xff]  ;;  %2646 = vmatprep.subr.mxu0 %v2997_v24  ;;  %2648 = vmatprep.mubr.msk.f32.mxu0 %vm2998_vm2, %v2997_v24  ;;  %s2999_s30 = smov 112   ;;  %s3000_s26 = smov 96   ;;  %vm604_vm3 = vcmask 130048   ;;  %vm680_vm4 = vcmask 64512  }
  0x3e   : > { %v2809_v22 = vpack.c.bf16 %v518_v20, %v517_v18  ;;  %2633 = vmatprep.mubr.msk.f32.mxu1 %vm519_vm1, %v3199_v21  ;;  %s3001_s28 = smov 80   ;;  %s3002_s2 = smov 64   ;;  %vm1510_vm5 = vcmask 523264  }
  0x3f   : > { %2806 = vmatprep.subr.bf16.mxu1 %v2805_v19  ;;  %s3003_s3 = smov 48   ;;  %s3004_s6 = smov 16  }
  0x40   : > { %2808 = vmatpush3.bf16.msra.mxu1 %v2805_v19 }
  0x41   : > { %2810 = vmatprep.subr.bf16.mxu1 %v2809_v22 }
  0x42   : > { %v3203_v23 = vld [vmem:[#allocation2 + $0x8] sm:$0xff] }
  0x44   : > { %2812 = vmatpush3.bf16.msra.mxu1 %v2809_v22  ;;  %v1275_v22 = vld [vmem:[%s3099_s14] sm:$0xff] }
  0x45   : > { %2636 = vmatprep.subr.mxu1 %v2997_v24 }
  0x47   : > { %2634 = vmatmul.mubr.msk.f32.vlgmr.msra.gmra.mrb[0].mxu1 %vm519_vm1, %v3203_v23 }
  0x48   : > { %2638 = vmatprep.mubr.msk.f32.mxu1 %vm2998_vm2, %v2997_v24 }
 0x11a   : > { %v3213_v25 = vpop.f32.mrb[0].mxu1 }
 0x11b   : > { %v3215_v26 = vpop.f32.mrb[1].mxu1 }
 0x11c   : > { %768 = vrot.lane.b32.xlu1 %v3215_v26, %s2999_s30  ;;  %602 = vrot.lane.b32.xlu0 %v3215_v26, %s3000_s26 }
 0x120   : > { %940 = vrot.lane.b32.xlu1 %v3213_v25, %s3000_s26  ;;  %770 = vrot.lane.b32.xlu0 %v3215_v26, %s3001_s28 }
 0x124   : > { %1104 = vrot.lane.b32.xlu1 %v3213_v25, %s2999_s30  ;;  %1106 = vrot.lane.b32.xlu0 %v3213_v25, %s3001_s28 }
 0x18e   : > { %v603_v27 = vpop.permute.xlu0 %602  ;;  %v769_v28 = vpop.permute.xlu1 %768 }
 0x18f   : > { %2637 = vmatpush3.xpose.msk.msra.mxu1 %vm604_vm3, %v603_v27  ;;  %v1277_v27 = vld [vmem:[%s3099_s14 + $0x10] sm:$0xff] }
 0x190   : > { %2641 = vmatprep.subr.mxu1 %v2997_v24 }
 0x192   : > { %2639 = vmatmul.mubr.msk.f32.vlgmr.msra.gmra.mrb[2].mxu1 %vm604_vm3, %v3215_v26  ;;  %v771_v29 = vpop.permute.xlu0 %770  ;;  %v941_v30 = vpop.permute.xlu1 %940 }
 0x193   : > { %2647 = vmatpush3.xpose.msk.msra.mxu0 %vm604_vm3, %v771_v29  ;;  %2643 = vmatprep.mubr.msk.f32.mxu1 %vm2998_vm2, %v2997_v24 }
 0x194   : > { %2656 = vmatprep.subr.mxu0 %v2997_v24 }
 0x196   : > { %2649 = vmatmul.mubr.msk.f32.vlgmr.msra.gmra.mrb[0].mxu0 %vm604_vm3, %v769_v28  ;;  %v1107_v31 = vpop.permute.xlu0 %1106  ;;  %v1105_v32 = vpop.permute.xlu1 %1104  ;;  %v1278_v28 = vld [vmem:[%s3099_s14 + $0x18] sm:$0xff] }
 0x197   : > { %2657 = vmatpush3.xpose.msk.msra.mxu0 %vm604_vm3, %v941_v30  ;;  %2658 = vmatprep.mubr.msk.f32.mxu0 %vm2998_vm2, %v2997_v24  ;;  %v2817_v29 = vpack.c.bf16 %v1278_v28, %v1277_v27 }
 0x198   : > { %2666 = vmatprep.subr.mxu0 %v2997_v24 }
 0x19a   : > { %2659 = vmatmul.mubr.msk.f32.vlgmr.msra.gmra.mrb[2].mxu0 %vm604_vm3, %v3213_v25 }
 0x19b   : > { %2667 = vmatpush3.xpose.msk.msra.mxu0 %vm604_vm3, %v1107_v31  ;;  %2668 = vmatprep.mubr.msk.f32.mxu0 %vm2998_vm2, %v2997_v24 }
 0x19e   : > { %2669 = vmatmul.mubr.msk.f32.vlgmr.msra.gmra.mrb[4].mxu0 %vm604_vm3, %v1105_v32 }
 0x265   : > { %v675_v33 = vpop.f32.mrb[2].mxu1 }
 0x266   : > { %v679_v34 = vmul.f32 0.17677669, %v675_v33  ;;  %v2640_v35 = vpop.f32.mrb[3].mxu1 }
 0x268   : > { %v681_v36 = vsel %vm680_vm4, %v679_v34, -inf }
 0x269   : > { %682 = vmax.xlane.f32.xlu0 %v681_v36  ;;  %v842_v37 = vpop.f32.mrb[0].mxu0 }
 0x26a   : > { %v846_v38 = vmul.f32 0.17677669, %v842_v37  ;;  %v2650_v39 = vpop.f32.mrb[1].mxu0 }
 0x26c   : > { %v847_v40 = vsel %vm680_vm4, %v846_v38, -inf }
 0x26d   : > { %848 = vmax.xlane.f32.xlu1 %v847_v40  ;;  %v1012_v41 = vpop.f32.mrb[2].mxu0 }
 0x26e   : > { %v1016_v42 = vmul.f32 0.17677669, %v1012_v41  ;;  %v2660_v43 = vpop.f32.mrb[3].mxu0  ;;  %v1279_v41 = vlaneseq }
 0x270   : > { %v1017_v44 = vsel %vm680_vm4, %v1016_v42, -inf }
 0x271   : > { %1018 = vmax.xlane.f32.xlu0 %v1017_v44  ;;  %v1178_v45 = vpop.f32.mrb[4].mxu0  ;;  %v3293_v44 = vld [vmem:[%s3116_s29] sm:$0x3f]  ;;  %s3589_s29 = sld [smem:[#allocation14_spill]] }
 0x272   : > { %v1182_v46 = vmul.f32 0.17677669, %v1178_v45  ;;  %v2670_v47 = vpop.f32.mrb[5].mxu0 }
 0x274   : > { %v1183_v48 = vsel %vm680_vm4, %v1182_v46, -inf }
 0x275   : > { %1184 = vmax.xlane.f32.xlu0 %v1183_v48 }
 0x277   : > { %s3590_s7 = scalar_lea.vmem %s3589_s29, %s3084_s23  ;;  %s3591_s23 = sld [smem:[#allocation10_spill]] }
 0x27d   : > { %p2495_p10 = scmp.ne.s32.totalorder %s3591_s23, 1 }
 0x27e   : > { %692 = vrot.lane.b32.xlu1 %v3215_v26, %s3002_s2  ;;  %s3592_s22 = sld [smem:[#allocation20_spill]] (!%p2495_p10)  ;;  %s3594_s8 = sld [smem:[#allocation17_spill]] (!%p2495_p10)  ;;  %vm3006_vm6 = vmmov (!%p2495_p10), 0   ;;  %vm1645_vm7 = vcmask (!%p2495_p10), 1040384   ;;  %vm2318_vm8 = vcmask (!%p2495_p10), 25600  }
 0x27f   : > { %s3595_s28 = sld [smem:[#allocation18_spill]] (!%p2495_p10) }
 0x284   : > { %s3593_s19 = smov (!%p2495_p10), %s3592_s22 }
 0x2f6   : > { %v683_v49 = vpop.xlane.xlu0 %682 }
 0x2f7   : > { %v684_v50 = vsub.f32 %v679_v34, %v683_v49 }
 0x2f9   : > { %v685_v51 = vmul.f32 1.442695, %v684_v50 }
 0x2fa   : > { %v849_v52 = vpop.xlane.xlu1 %848 }
 0x2fb   : > { %2920 = vpow2.f32 %v685_v51  ;;  %v850_v53 = vsub.f32 %v846_v38, %v849_v52 }
 0x2fd   : > { %v851_v54 = vmul.f32 1.442695, %v850_v53 }
 0x2fe   : > { %v693_v55 = vpop.permute.xlu1 %692  ;;  %v1019_v56 = vpop.xlane.xlu0 %1018 }
 0x2ff   : > { %2922 = vpow2.f32 %v851_v54  ;;  %v1020_v57 = vsub.f32 %v1016_v42, %v1019_v56  ;;  %2642 = vmatpush3.msra.mxu1 %v693_v55  ;;  %v3289_v42 = vshrl.u32 %v1279_v41, 7 }
 0x300   : > { %2651 = vmatprep.subr.mxu1 %v2997_v24 }
 0x301   : > { %v1021_v58 = vmul.f32 1.442695, %v1020_v57  ;;  %v1281_v43 = vsub.s32 0, %v3289_v42  ;;  %v1401_v27 = vsub.s32 2, %v3289_v42 }
 0x302   : > { %v1185_v59 = vpop.xlane.xlu0 %1184 }
 0x303   : > { %2924 = vpow2.f32 %v1021_v58  ;;  %v1186_v60 = vsub.f32 %v1182_v46, %v1185_v59  ;;  %v1282_v45 = vrot.slane %v3293_v44, %v1281_v43 }
 0x305   : > { %v2921_v61 = vpop.eup %2920  ;;  %v1187_v62 = vmul.f32 1.442695, %v1186_v60 }
 0x306   : > { %v687_v63 = vsel %vm680_vm4, %v2921_v61, 0.0 }
 0x307   : > { %2926 = vpow2.f32 %v1187_v62  ;;  %688 = vadd.xlane.f32.xlu1 %v687_v63  ;;  %v1405_v62 = vld [vmem:[%s3104_s17] sm:$0xff]  ;;  %v1406_v63 = vld [vmem:[%s3104_s17 + $0x8] sm:$0xff] }
 0x309   : > { %v2923_v0 = vpop.eup %2922 }
 0x30a   : > { %v853_v1 = vsel %vm680_vm4, %v2923_v0, 0.0 }
 0x30b   : > { %854 = vadd.xlane.f32.xlu0 %v853_v1  ;;  %v1407_v1 = vld [vmem:[%s3104_s17 + $0x10] sm:$0xff] }
 0x30d   : > { %v2925_v2 = vpop.eup %2924 }
 0x30e   : > { %v1023_v3 = vsel %vm680_vm4, %v2925_v2, 0.0 }
 0x30f   : > { %1024 = vadd.xlane.f32.xlu1 %v1023_v3 }
 0x311   : > { %v2927_v4 = vpop.eup %2926 }
 0x312   : > { %v1189_v5 = vsel %vm680_vm4, %v2927_v4, 0.0 }
 0x313   : > { %1190 = vadd.xlane.f32.xlu0 %v1189_v5  ;;  %v1499_v5 = vld [vmem:[%s3110_s21 + $0x8] sm:$0xff] }
 0x320   : > { %1028 = vrot.lane.b32.xlu1 %v3213_v25, %s3002_s2 }
 0x324   : > { %1194 = vrot.lane.b32.xlu1 %v3213_v25, %s3003_s3  ;;  %v1276_v25 = vld [vmem:[%s3099_s14 + $0x8] sm:$0xff] }
 0x329   : > { %858 = vrot.lane.b32.xlu0 %v3215_v26, %s3003_s3  ;;  %v2813_v26 = vpack.c.bf16 %v1276_v25, %v1275_v22 }
 0x32b   : > { %2814 = vmatprep.subr.bf16.mxu0 %v2813_v26 }
 0x32c   : > { %2816 = vmatpush3.bf16.msra.mxu0 %v2813_v26  ;;  %v1395_v26 = vsub.s32 1, %v3289_v42 }
 0x32d   : > { %2818 = vmatprep.subr.bf16.mxu0 %v2817_v29 }
 0x32e   : > { %v1396_v28 = vrot.slane %v3293_v44, %v1395_v26 }
 0x330   : > { %2820 = vmatpush3.bf16.msra.mxu0 %v2817_v29 }
 0x394   : > { %v689_v6 = vpop.xlane.xlu1 %688 }
 0x395   : > { %2928 = vrcp.f32 %v689_v6  ;;  %v1500_v6 = vld [vmem:[%s3110_s21 + $0x10] sm:$0xff] }
 0x398   : > { %v855_v7 = vpop.xlane.xlu0 %854 }
 0x399   : > { %2930 = vrcp.f32 %v855_v7 }
 0x39c   : > { %v1025_v8 = vpop.xlane.xlu1 %1024 }
 0x39d   : > { %2932 = vrcp.f32 %v1025_v8  ;;  %v1501_v8 = vld [vmem:[%s3110_s21 + $0x18] sm:$0xff] }
 0x39f   : > { %v2929_v9 = vpop.eup %2928 }
 0x3a0   : > { %v3257_v10 = vmul.f32 %v2929_v9, %v2921_v61  ;;  %v1191_v11 = vpop.xlane.xlu0 %1190  ;;  %v1029_v14 = vpop.permute.xlu1 %1028  ;;  %v2833_v9 = vpack.c.bf16 %v1501_v8, %v1500_v6 }
 0x3a1   : > { %2934 = vrcp.f32 %v1191_v11  ;;  %v1502_v11 = vld [vmem:[%s3110_s21 + $0x20] sm:$0xff] }
 0x3a2   : > { %2644 = vmatmul.mubr.msk.f32.vlgmr.msra.gmra.mrb[4].mxu1 %vm680_vm4, %v3257_v10  ;;  %1638 = vst.msk [vmem:[%s3592_s22] sm:$0xff] (!%p2495_p10), %vm680_vm4, %v3257_v10  ;;  %v2496_v10 = vld [vmem:[%s3594_s8 + $0x20] sm:$0xff] (!%p2495_p10) }
 0x3a3   : > { %v2931_v12 = vpop.eup %2930  ;;  %2653 = vmatprep.mubr.msk.f32.mxu1 %vm2998_vm2, %v2997_v24 }
 0x3a4   : > { %v3263_v13 = vmul.f32 %v2931_v12, %v2923_v0  ;;  %v859_v15 = vpop.permute.xlu0 %858  ;;  %v1195_v18 = vpop.permute.xlu1 %1194  ;;  %v2821_v0 = vpack.c.bf16 %v1406_v63, %v1405_v62  ;;  %v1503_v12 = vld [vmem:[%s3110_s21 + $0x28] sm:$0xff] }
 0x3a5   : > { %2652 = vmatpush3.msra.mxu1 %v859_v15 }
 0x3a6   : > { %2654 = vmatmul.mubr.msk.f32.vlgmr.msra.gmra.mrb[6].mxu1 %vm680_vm4, %v3263_v13  ;;  %2661 = vmatprep.subr.mxu1 %v2997_v24  ;;  %1639 = vst.msk [vmem:[%s3593_s19 + $0x8] sm:$0xff] (!%p2495_p10), %vm680_vm4, %v3263_v13  ;;  %v2497_v13 = vld [vmem:[%s3594_s8 + $0x28] sm:$0xff] (!%p2495_p10) }
 0x3a7   : > { %v2933_v16 = vpop.eup %2932  ;;  %2662 = vmatpush3.msra.mxu1 %v1029_v14  ;;  %2663 = vmatprep.mubr.msk.f32.mxu1 %vm2998_vm2, %v2997_v24  ;;  %v2837_v14 = vpack.c.bf16 %v1503_v12, %v1502_v11  ;;  %v1628_v11 = vsub.s32 5, %v3289_v42 }
 0x3a8   : > { %v3270_v17 = vmul.f32 %v2933_v16, %v2925_v2  ;;  %2671 = vmatprep.subr.mxu1 %v2997_v24  ;;  %v1408_v2 = vld [vmem:[%s3104_s17 + $0x18] sm:$0xff] }
 0x3a9   : > { %v2825_v3 = vpack.c.bf16 %v1408_v2, %v1407_v1 }
 0x3aa   : > { %2664 = vmatmul.mubr.msk.f32.vlgmr.msra.gmra.mrb[8].mxu1 %vm680_vm4, %v3270_v17  ;;  %1640 = vst.msk [vmem:[%s3593_s19 + $0x10] sm:$0xff] (!%p2495_p10), %vm680_vm4, %v3270_v17  ;;  %v2846_v17 = vpack.c.bf16 (!%p2495_p10), %v2497_v13, %v2496_v10  ;;  %v2529_v10 = vld [vmem:[%s3594_s8 + $0xf0] sm:$0xff] (!%p2495_p10)  ;;  %v2530_v13 = vld [vmem:[%s3594_s8 + $0xf8] sm:$0xff] (!%p2495_p10) }
 0x3ab   : > { %v2935_v19 = vpop.eup %2934  ;;  %2672 = vmatpush3.msra.mxu1 %v1195_v18  ;;  %2673 = vmatprep.mubr.msk.f32.mxu1 %vm2998_vm2, %v2997_v24 }
 0x3ac   : > { %v3277_v20 = vmul.f32 %v2935_v19, %v2927_v4  ;;  %2822 = vmatprep.subr.bf16.mxu1 %v2821_v0  ;;  %v1498_v4 = vld [vmem:[%s3110_s21] sm:$0xff] }
 0x3ad   : > { %v2829_v7 = vpack.c.bf16 %v1499_v5, %v1498_v4 }
 0x3ae   : > { %2674 = vmatmul.mubr.msk.f32.vlgmr.msra.gmra.mrb[10].mxu1 %vm680_vm4, %v3277_v20  ;;  %1641 = vst.msk [vmem:[%s3593_s19 + $0x18] sm:$0xff] (!%p2495_p10), %vm680_vm4, %v3277_v20  ;;  %v1648_v20 = vld [vmem:[%s3594_s8 + $0x8] sm:$0xff] (!%p2495_p10) }
 0x3af   : > { %2824 = vmatpush3.bf16.msra.mxu1 %v2821_v0  ;;  %2830 = vmatprep.subr.bf16.mxu0 %v2829_v7 }
 0x3b0   : > { %2826 = vmatprep.subr.bf16.mxu1 %v2825_v3 }
 0x3b3   : > { %2828 = vmatpush3.bf16.msra.mxu1 %v2825_v3 }
 0x475   : > { %v764_v30 = vpop.f32.mrb[4].mxu1 }
 0x476   : > { %v2645_v31 = vpop.f32.mrb[5].mxu1 }
 0x477   : > { %v1402_v31 = vrot.slane %v3293_v44, %v1401_v27 }
 0x479   : > { %v930_v32 = vpop.f32.mrb[6].mxu1 }
 0x47a   : > { %935 = vrot.lane.b32.xlu0 %v930_v32, %s3004_s6  ;;  %v2655_v24 = vpop.f32.mrb[7].mxu1 }
 0x47d   : > { %v1100_v33 = vpop.f32.mrb[8].mxu1 }
 0x47e   : > { %v2665_v34 = vpop.f32.mrb[9].mxu1 }
 0x481   : > { %v1266_v35 = vpop.f32.mrb[10].mxu1 }
 0x482   : > { %1271 = vrot.lane.b32.xlu1 %v1266_v35, %s3004_s6  ;;  %v2675_v36 = vpop.f32.mrb[11].mxu1 }
 0x4ec   : > { %v936_v37 = vpop.permute.xlu0 %935 }
 0x4ed   : > { %v938_v38 = vsel %vm604_vm3, %v764_v30, %v936_v37  ;;  %v1504_v37 = vld [vmem:[%s3110_s21 + $0x30] sm:$0xff] }
 0x4ee   : > { %2684 = vmatprep.mubr.msk.f32.mxu0 %vm519_vm1, %v938_v38  ;;  %v1505_v38 = vld [vmem:[%s3110_s21 + $0x38] sm:$0xff] }
 0x4f4   : > { %v1272_v39 = vpop.permute.xlu1 %1271 }
 0x4f5   : > { %v1274_v40 = vsel %vm604_vm3, %v1100_v33, %v1272_v39  ;;  %v2841_v39 = vpack.c.bf16 %v1505_v38, %v1504_v37  ;;  %v2502_v37 = vld [vmem:[%s3594_s8 + $0x40] sm:$0xff] (!%p2495_p10)  ;;  %v2503_v38 = vld [vmem:[%s3594_s8 + $0x48] sm:$0xff] (!%p2495_p10) }
 0x4f6   : > { %2685 = vmatmul.mubr.msk.f32.vlgmr.msra.gmra.mrb[6].mxu0 %vm519_vm1, %v1274_v40  ;;  %v2490_v40 = vld [vmem:[%s3590_s7] ss:$0 sm:$0xff] }
 0x4f7   : > { %2832 = vmatpush3.bf16.msra.mxu0 %v2829_v7 }
 0x4f8   : > { %2834 = vmatprep.subr.bf16.mxu0 %v2833_v9 }
 0x4fb   : > { %2836 = vmatpush3.bf16.msra.mxu0 %v2833_v9  ;;  %v1622_v9 = vsub.s32 4, %v3289_v42 }
 0x4fc   : > { %2838 = vmatprep.subr.bf16.mxu0 %v2837_v14 }
 0x4fd   : > { %v1623_v12 = vrot.slane %v3293_v44, %v1622_v9 }
 0x4ff   : > { %2840 = vmatpush3.bf16.msra.mxu0 %v2837_v14 }
 0x500   : > { %2842 = vmatprep.subr.bf16.mxu0 %v2841_v39 }
 0x503   : > { %2844 = vmatpush3.bf16.msra.mxu0 %v2841_v39  ;;  %v2507_v39 = vld [vmem:[%s3594_s8 + $0x60] sm:$0xff] (!%p2495_p10) }
 0x5c9   : > { %v2686_v46 = vpop.f32.mrb[6].mxu0 }
 0x5ca   : > { %v1361_v47 = vadd.f32 %v2686_v46, %v1282_v45  ;;  %v1355_v48 = vpop.f32.mrb[7].mxu0 }
 0x5cb   : > { %v1356_v49 = vadd.f32 %v1355_v48, %v1282_v45 }
 0x5cc   : > { %v1365_v50 = vadd.f32 %v1361_v47, %v3203_v23 }
 0x5cd   : > { %v1364_v51 = vadd.f32 %v1356_v49, %v3199_v21  ;;  %v1508_v49 = vsub.s32 3, %v3289_v42  ;;  %v1647_v42 = vld [vmem:[%s3594_s8] sm:$0xff] (!%p2495_p10) }
 0x5ce   : > { %v1369_v52 = vsel %vm519_vm1, %v1365_v50, 0.0 }
 0x5cf   : > { %1370 = vadd.xlane.f32.xlu1 %v1369_v52  ;;  %v1366_v53 = vsel %vm519_vm1, %v1364_v51, 0.0 }
 0x5d0   : > { %1367 = vadd.xlane.f32.xlu0 %v1366_v53 }
 0x65c   : > { %v1371_v54 = vpop.xlane.xlu1 %1370 }
 0x65d   : > { %v1374_v55 = vmul.f32 0.03125, %v1371_v54  ;;  %v1368_v56 = vpop.xlane.xlu0 %1367 }
 0x65e   : > { %v1373_v57 = vmul.f32 0.03125, %v1368_v56 }
 0x65f   : > { %v1376_v58 = vsub.f32 %v1365_v50, %v1374_v55  ;;  %v1509_v50 = vrot.slane %v3293_v44, %v1508_v49  ;;  %v2509_v49 = vld [vmem:[%s3594_s8 + $0x70] sm:$0xff] (!%p2495_p10) }
 0x660   : > { %v1375_v59 = vsub.f32 %v1364_v51, %v1373_v57 }
 0x661   : > { %v1378_v23 = vmul.f32 %v1376_v58, %v1376_v58 }
 0x662   : > { %v1377_v60 = vmul.f32 %v1375_v59, %v1375_v59 }
 0x663   : > { %v1382_v61 = vsel %vm519_vm1, %v1378_v23, 0.0 }
 0x664   : > { %v1379_v21 = vsel %vm519_vm1, %v1377_v60, 0.0 }
 0x665   : > { %1380 = vadd.xlane.f32.xlu0 %v1379_v21 }
 0x669   : > { %1383 = vadd.xlane.f32.xlu0 %v1382_v61 }
 0x6f2   : > { %v1381_v15 = vpop.xlane.xlu0 %1380 }
 0x6f3   : > { %v1385_v16 = vmul.f32 0.03125, %v1381_v15 }
 0x6f5   : > { %v1387_v18 = vadd.f32 1e-05, %v1385_v16  ;;  %v1629_v16 = vrot.slane %v3293_v44, %v1628_v11  ;;  %v3005_v44 = vmov (!%p2495_p10), 0.0|0.0  }
 0x6f6   : > { %v1384_v19 = vpop.xlane.xlu0 %1383  ;;  %2845 = vmatprep.subr.bf16.mxu0 (!%p2495_p10), %v3005_v44  ;;  %2851 = vmatprep.subr.bf16.mxu1 (!%p2495_p10), %v3005_v44 }
 0x6f7   : > { %2936 = vrsqrt.f32 %v1387_v18  ;;  %v1386_v22 = vmul.f32 0.03125, %v1384_v19 }
 0x6f9   : > { %v1388_v25 = vadd.f32 1e-05, %v1386_v22 }
 0x6fb   : > { %2938 = vrsqrt.f32 %v1388_v25 }
 0x701   : > { %v2937_v29 = vpop.eup %2936 }
 0x702   : > { %v1391_v30 = vmul.f32 %v2937_v29, %v1375_v59  ;;  %v2499_v29 = vld [vmem:[%s3594_s8 + $0x38] sm:$0xff] (!%p2495_p10) }
 0x704   : > { %v1397_v32 = vmul.f32 %v1396_v28, %v1391_v30  ;;  %v2852_v30 = vpack.c.bf16 (!%p2495_p10), %v1648_v20, %v1647_v42 }
 0x705   : > { %v2939_v24 = vpop.eup %2938 }
 0x706   : > { %v1392_v33 = vmul.f32 %v2939_v24, %v1376_v58  ;;  %v1403_v34 = vadd.f32 %v1402_v31, %v1397_v32  ;;  %v1650_v32 = vld [vmem:[%s3594_s8 + $0x18] sm:$0xff] (!%p2495_p10)  ;;  %v3007_v24 = vmov (!%p2495_p10), 0.0  }
 0x708   : > { %v1398_v35 = vmul.f32 %v1396_v28, %v1392_v33  ;;  %2695 = vmatprep.mubr.msk.f32.mxu1 %vm519_vm1, %v1403_v34  ;;  %v2498_v28 = vld [vmem:[%s3594_s8 + $0x30] sm:$0xff] (!%p2495_p10) }
 0x709   : > { %v2849_v33 = vpack.c.bf16 (!%p2495_p10), %v2499_v29, %v2498_v28  ;;  %v2891_v28 = vpack.c.bf16 (!%p2495_p10), %v2530_v13, %v2529_v10 }
 0x70a   : > { %v1404_v36 = vadd.f32 %v1402_v31, %v1398_v35  ;;  %v1649_v31 = vld [vmem:[%s3594_s8 + $0x10] sm:$0xff] (!%p2495_p10) }
 0x70b   : > { %v2855_v35 = vpack.c.bf16 (!%p2495_p10), %v1650_v32, %v1649_v31 }
 0x70c   : > { %2696 = vmatmul.mubr.msk.f32.vlgmr.msra.gmra.mrb[12].mxu1 %vm519_vm1, %v1404_v36 }
 0x70d   : > { %2736 = vmatprep.mubr.msk.f32.mxu1 (!%p2495_p10), %vm3006_vm6, %v3007_v24  ;;  %2853 = vmatpush3.bf16.msra.mxu1 (!%p2495_p10), %v2852_v30 }
 0x70e   : > { %2854 = vmatprep.subr.bf16.mxu1 (!%p2495_p10), %v3005_v44 }
 0x711   : > { %2856 = vmatpush3.bf16.msra.mxu1 (!%p2495_p10), %v2855_v35 }
 0x712   : > { %2863 = vmatprep.subr.bf16.mxu1 (!%p2495_p10), %v3005_v44 }
 0x7df   : > { %v2697_v41 = vpop.f32.mrb[12].mxu1 }
 0x7e0   : > { %v1493_v43 = vadd.f32 %v2697_v41, %v2490_v40  ;;  %v1487_v45 = vpop.f32.mrb[13].mxu1 }
 0x7e1   : > { %v1488_v46 = vadd.f32 %v2490_v40, %v1487_v45  ;;  %v2508_v40 = vld [vmem:[%s3594_s8 + $0x68] sm:$0xff] (!%p2495_p10) }
 0x7e2   : > { %v1497_v48 = vmax.f32 %v1493_v43, 0.0  ;;  %v2858_v43 = vpack.c.bf16 (!%p2495_p10), %v2503_v38, %v2502_v37 }
 0x7e3   : > { %v1496_v47 = vmax.f32 %v1488_v46, 0.0  ;;  %v2864_v46 = vpack.c.bf16 (!%p2495_p10), %v2508_v40, %v2507_v39 }
 0x7e5   : > { %2714 = vmatprep.mubr.msk.f32.mxu0 %vm1510_vm5, %v1496_v47  ;;  %v2504_v47 = vld [vmem:[%s3594_s8 + $0x50] sm:$0xff] (!%p2495_p10) }
 0x7e6   : > { %2715 = vmatmul.mubr.msk.f32.vlgmr.msra.gmra.mrb[8].mxu0 %vm1510_vm5, %v1497_v48  ;;  %v2505_v48 = vld [vmem:[%s3594_s8 + $0x58] sm:$0xff] (!%p2495_p10) }
 0x7e7   : > { %2725 = vmatprep.mubr.msk.f32.mxu0 (!%p2495_p10), %vm3006_vm6, %v3007_v24  ;;  %2847 = vmatpush3.bf16.msra.mxu0 (!%p2495_p10), %v2846_v17 }
 0x7e8   : > { %2848 = vmatprep.subr.bf16.mxu0 (!%p2495_p10), %v3005_v44 }
 0x7eb   : > { %2850 = vmatpush3.bf16.msra.mxu0 (!%p2495_p10), %v2849_v33 }
 0x7ec   : > { %2857 = vmatprep.subr.bf16.mxu0 (!%p2495_p10), %v3005_v44 }
 0x8b9   : > { %v2716_v51 = vpop.f32.mrb[8].mxu0 }
 0x8ba   : > { %v1589_v52 = vadd.f32 %v2716_v51, %v1509_v50  ;;  %v1583_v53 = vpop.f32.mrb[9].mxu0  ;;  %v2861_v51 = vpack.c.bf16 (!%p2495_p10), %v2505_v48, %v2504_v47 }
 0x8bb   : > { %v1584_v54 = vadd.f32 %v1583_v53, %v1509_v50  ;;  %v2510_v50 = vld [vmem:[%s3594_s8 + $0x78] sm:$0xff] (!%p2495_p10) }
 0x8bc   : > { %v1593_v55 = vadd.f32 %v1589_v52, %v1404_v36 }
 0x8bd   : > { %v1592_v56 = vadd.f32 %v1584_v54, %v1403_v34  ;;  %v2867_v54 = vpack.c.bf16 (!%p2495_p10), %v2510_v50, %v2509_v49 }
 0x8be   : > { %v1597_v57 = vsel %vm519_vm1, %v1593_v55, 0.0 }
 0x8bf   : > { %1598 = vadd.xlane.f32.xlu0 %v1597_v57  ;;  %v1594_v58 = vsel %vm519_vm1, %v1592_v56, 0.0 }
 0x8c0   : > { %1595 = vadd.xlane.f32.xlu1 %v1594_v58 }
 0x94c   : > { %v1599_v59 = vpop.xlane.xlu0 %1598 }
 0x94d   : > { %v1601_v60 = vmul.f32 0.03125, %v1599_v59  ;;  %v1596_v21 = vpop.xlane.xlu1 %1595  ;;  %v2517_v59 = vld [vmem:[%s3594_s8 + $0xa0] sm:$0xff] (!%p2495_p10) }
 0x94e   : > { %v1600_v23 = vmul.f32 0.03125, %v1596_v21 }
 0x94f   : > { %v1603_v61 = vsub.f32 %v1593_v55, %v1601_v60  ;;  %v2512_v55 = vld [vmem:[%s3594_s8 + $0x80] sm:$0xff] (!%p2495_p10)  ;;  %v2518_v60 = vld [vmem:[%s3594_s8 + $0xa8] sm:$0xff] (!%p2495_p10) }
 0x950   : > { %v1602_v62 = vsub.f32 %v1592_v56, %v1600_v23  ;;  %v2513_v56 = vld [vmem:[%s3594_s8 + $0x88] sm:$0xff] (!%p2495_p10) }
 0x951   : > { %v1605_v63 = vmul.f32 %v1603_v61, %v1603_v61  ;;  %v2870_v23 = vpack.c.bf16 (!%p2495_p10), %v2513_v56, %v2512_v55 }
 0x952   : > { %v1604_v0 = vmul.f32 %v1602_v62, %v1602_v62 }
 0x953   : > { %v1609_v1 = vsel %vm519_vm1, %v1605_v63, 0.0  ;;  %v2514_v63 = vld [vmem:[%s3594_s8 + $0x90] sm:$0xff] (!%p2495_p10) }
 0x954   : > { %1610 = vadd.xlane.f32.xlu0 %v1609_v1  ;;  %v1606_v2 = vsel %vm519_vm1, %v1604_v0, 0.0  ;;  %v2515_v0 = vld [vmem:[%s3594_s8 + $0x98] sm:$0xff] (!%p2495_p10)  ;;  %v2519_v1 = vld [vmem:[%s3594_s8 + $0xb0] sm:$0xff] (!%p2495_p10) }
 0x955   : > { %1607 = vadd.xlane.f32.xlu1 %v1606_v2  ;;  %v2520_v2 = vld [vmem:[%s3594_s8 + $0xb8] sm:$0xff] (!%p2495_p10) }
 0x9e1   : > { %v1611_v3 = vpop.xlane.xlu0 %1610 }
 0x9e2   : > { %v1613_v4 = vmul.f32 0.03125, %v1611_v3  ;;  %v1608_v5 = vpop.xlane.xlu1 %1607  ;;  %v2873_v3 = vpack.c.bf16 (!%p2495_p10), %v2515_v0, %v2514_v63 }
 0x9e3   : > { %v1612_v6 = vmul.f32 0.03125, %v1608_v5 }
 0x9e4   : > { %v1615_v7 = vadd.f32 1e-05, %v1613_v4 }
 0x9e5   : > { %v1614_v8 = vadd.f32 1e-05, %v1612_v6  ;;  %v2879_v6 = vpack.c.bf16 (!%p2495_p10), %v2520_v2, %v2519_v1 }
 0x9e6   : > { %2940 = vrsqrt.f32 %v1615_v7  ;;  %v2522_v7 = vld [vmem:[%s3594_s8 + $0xc0] sm:$0xff] (!%p2495_p10) }
 0x9e7   : > { %2942 = vrsqrt.f32 %v1614_v8  ;;  %v2523_v8 = vld [vmem:[%s3594_s8 + $0xc8] sm:$0xff] (!%p2495_p10) }
 0x9f0   : > { %v2941_v14 = vpop.eup %2940 }
 0x9f1   : > { %v2943_v15 = vpop.eup %2942  ;;  %v1619_v18 = vmul.f32 %v2941_v14, %v1603_v61  ;;  %v2528_v14 = vld [vmem:[%s3594_s8 + $0xe8] sm:$0xff] (!%p2495_p10) }
 0x9f2   : > { %v1618_v19 = vmul.f32 %v2943_v15, %v1602_v62  ;;  %1637 = sbr.rel (%p2495_p10) target bundleno = 2798 (0xaee), region = 64  ;;  %v2876_v62 = vpack.c.bf16 (!%p2495_p10), %v2518_v60, %v2517_v59 }
 0x9f3   : > { %v1625_v22 = vmul.f32 %v1623_v12, %v1619_v18 }
 0x9f4   : > { %v1624_v25 = vmul.f32 %v1623_v12, %v1618_v19  ;;  %v2527_v12 = vld [vmem:[%s3594_s8 + $0xe0] sm:$0xff] (!%p2495_p10) }
 0x9f5   : > { %v3335_v26 = vadd.f32 %v1629_v16, %v1625_v22  ;;  %v2888_v19 = vpack.c.bf16 (!%p2495_p10), %v2528_v14, %v2527_v12  ;;  %v2524_v22 = vld [vmem:[%s3594_s8 + $0xd0] sm:$0xff] (!%p2495_p10) }
 0x9f6   : > { %v3337_v27 = vadd.f32 %v1629_v16, %v1624_v25  ;;  %v2882_v16 = vpack.c.bf16 (!%p2495_p10), %v2523_v8, %v2522_v7  ;;  %v2525_v25 = vld [vmem:[%s3594_s8 + $0xd8] sm:$0xff] (!%p2495_p10) }
 0x9f7   : > { %1633 = vst.msk [vmem:[#allocation2 + $0x8] sm:$0xff] %vm519_vm1, %v3335_v26  ;;  %v1643_v36 = vrot.slane (!%p2495_p10), %v3335_v26, 7  ;;  %v1808_v53 = vrot.slane (!%p2495_p10), %v3335_v26, 1  ;;  %v1892_v58 = vrot.slane (!%p2495_p10), %v3335_v26, 2  ;;  %v1976_v5 = vrot.slane (!%p2495_p10), %v3335_v26, 3 }
 0x9f8   : > { %1632 = vst.msk [vmem:[#allocation2] sm:$0xff] %vm519_vm1, %v3337_v27  ;;  %v1652_v34 = vrot.slane (!%p2495_p10), %v3337_v27, 1  ;;  %v1806_v52 = vrot.slane (!%p2495_p10), %v3337_v27, 2  ;;  %v1890_v57 = vrot.slane (!%p2495_p10), %v3337_v27, 3  ;;  %v1974_v4 = vrot.slane (!%p2495_p10), %v3337_v27, 4 }
 0x9f9   : > { %v1646_v45 = vsel %vm1645_vm7, %v3337_v27, %v1643_v36  ;;  %v2058_v9 = vrot.slane %v3337_v27, 5  ;;  %v2060_v11 = vrot.slane %v3335_v26, 4  ;;  %v2885_v42 = vpack.c.bf16 %v2525_v25, %v2524_v22 }
 0x9fa   : > { %v1654_v41 = vsel %vm1645_vm7, %v1652_v34, %v3335_v26  ;;  %2737 = vmatmul.mubr.msk.f32.vlgmr.msra.gmra.mrb[0].mxu1 %vm519_vm1, %v1646_v45  ;;  %v1810_v21 = vsel %vm1645_vm7, %v1806_v52, %v1808_v53  ;;  %v1894_v61 = vsel %vm1645_vm7, %v1890_v57, %v1892_v58  ;;  %v1978_v15 = vsel %vm1645_vm7, %v1974_v4, %v1976_v5  ;;  %v2532_v52 = vld [vmem:[%s3595_s28] ss:$0 sm:$0xff] }
 0x9fb   : > { %2726 = vmatmul.mubr.msk.f32.vlgmr.msra.gmra.mrb[0].mxu0 %vm519_vm1, %v1654_v41  ;;  %2865 = vmatpush3.bf16.msra.mxu1 %v2864_v46  ;;  %v2062_v18 = vsel %vm1645_vm7, %v2058_v9, %v2060_v11  ;;  %v2142_v17 = vrot.slane %v3337_v27, 6  ;;  %v2144_v20 = vrot.slane %v3335_v26, 5  ;;  %v2226_v29 = vrot.slane %v3337_v27, 7 }
 0x9fc   : > { %2859 = vmatpush3.bf16.msra.mxu0 %v2858_v43  ;;  %2866 = vmatprep.subr.bf16.mxu1 %v3005_v44  ;;  %v2228_v30 = vrot.slane %v3335_v26, 6 }
 0x9fd   : > { %2860 = vmatprep.subr.bf16.mxu0 %v3005_v44  ;;  %2747 = vmatprep.mubr.msk.f32.mxu0 %vm3006_vm6, %v3007_v24  ;;  %v2146_v31 = vsel %vm1645_vm7, %v2142_v17, %v2144_v20 }
 0x9fe   : > { %2758 = vmatprep.mubr.msk.f32.mxu1 %vm3006_vm6, %v3007_v24  ;;  %v2230_v32 = vsel %vm1645_vm7, %v2226_v29, %v2228_v30 }
 0x9ff   : > { %2868 = vmatpush3.bf16.msra.mxu1 %v2867_v54 }
 0xa00   : > { %2862 = vmatpush3.bf16.msra.mxu0 %v2861_v51  ;;  %2875 = vmatprep.subr.bf16.mxu1 %v3005_v44 }
 0xa01   : > { %2869 = vmatprep.subr.bf16.mxu0 %v3005_v44 }
 0xa02   : > { %2759 = vmatmul.mubr.msk.f32.vlgmr.msra.gmra.mrb[2].mxu1 %vm519_vm1, %v1894_v61 }
 0xa03   : > { %2748 = vmatmul.mubr.msk.f32.vlgmr.msra.gmra.mrb[2].mxu0 %vm519_vm1, %v1810_v21  ;;  %2877 = vmatpush3.bf16.msra.mxu1 %v2876_v62 }
 0xa04   : > { %2871 = vmatpush3.bf16.msra.mxu0 %v2870_v23  ;;  %2878 = vmatprep.subr.bf16.mxu1 %v3005_v44 }
 0xa05   : > { %2872 = vmatprep.subr.bf16.mxu0 %v3005_v44  ;;  %2769 = vmatprep.mubr.msk.f32.mxu0 %vm3006_vm6, %v3007_v24 }
 0xa06   : > { %2780 = vmatprep.mubr.msk.f32.mxu1 %vm3006_vm6, %v3007_v24 }
 0xa07   : > { %2880 = vmatpush3.bf16.msra.mxu1 %v2879_v6 }
 0xa08   : > { %2874 = vmatpush3.bf16.msra.mxu0 %v2873_v3  ;;  %2887 = vmatprep.subr.bf16.mxu1 %v3005_v44 }
 0xa09   : > { %2881 = vmatprep.subr.bf16.mxu0 %v3005_v44 }
 0xa0a   : > { %2781 = vmatmul.mubr.msk.f32.vlgmr.msra.gmra.mrb[4].mxu1 %vm519_vm1, %v2062_v18 }
 0xa0b   : > { %2770 = vmatmul.mubr.msk.f32.vlgmr.msra.gmra.mrb[4].mxu0 %vm519_vm1, %v1978_v15  ;;  %2889 = vmatpush3.bf16.msra.mxu1 %v2888_v19 }
 0xa0c   : > { %2883 = vmatpush3.bf16.msra.mxu0 %v2882_v16  ;;  %2890 = vmatprep.subr.bf16.mxu1 %v3005_v44 }
 0xa0d   : > { %2884 = vmatprep.subr.bf16.mxu0 %v3005_v44  ;;  %2791 = vmatprep.mubr.msk.f32.mxu0 %vm3006_vm6, %v3007_v24 }
 0xa0e   : > { %2802 = vmatprep.mubr.msk.f32.mxu1 %vm3006_vm6, %v3007_v24 }
 0xa0f   : > { %2892 = vmatpush3.bf16.msra.mxu1 %v2891_v28 }
 0xa10   : > { %2886 = vmatpush3.bf16.msra.mxu0 %v2885_v42 }
 0xa12   : > { %2803 = vmatmul.mubr.msk.f32.vlgmr.msra.gmra.mrb[6].mxu1 %vm519_vm1, %v2230_v32 }
 0xa13   : > { %2792 = vmatmul.mubr.msk.f32.vlgmr.msra.gmra.mrb[6].mxu0 %vm519_vm1, %v2146_v31 }
 0xacd   : > { %v1802_v33 = vpop.f32.mrb[0].mxu1 }
 0xace   : > { %v1729_v27 = vpop.f32.mrb[0].mxu0  ;;  %v2738_v34 = vpop.f32.mrb[1].mxu1 }
 0xacf   : > { %v2727_v26 = vpop.f32.mrb[1].mxu0  ;;  %v1803_v44 = vadd.f32 %v1802_v33, %v1729_v27 }
 0xad5   : > { %v1969_v38 = vpop.f32.mrb[2].mxu1 }
 0xad6   : > { %v1885_v35 = vpop.f32.mrb[2].mxu0  ;;  %v2760_v24 = vpop.f32.mrb[3].mxu1 }
 0xad7   : > { %v1889_v36 = vadd.f32 %v1885_v35, %v1803_v44  ;;  %v2749_v37 = vpop.f32.mrb[3].mxu0 }
 0xad9   : > { %v1973_v39 = vadd.f32 %v1969_v38, %v1889_v36 }
 0xadd   : > { %v2137_v45 = vpop.f32.mrb[4].mxu1 }
 0xade   : > { %v2053_v40 = vpop.f32.mrb[4].mxu0  ;;  %v2782_v46 = vpop.f32.mrb[5].mxu1 }
 0xadf   : > { %v2057_v41 = vadd.f32 %v2053_v40, %v1973_v39  ;;  %v2771_v43 = vpop.f32.mrb[5].mxu0 }
 0xae1   : > { %v2141_v47 = vadd.f32 %v2137_v45, %v2057_v41 }
 0xae5   : > { %v2305_v51 = vpop.f32.mrb[6].mxu1 }
 0xae6   : > { %v2221_v48 = vpop.f32.mrb[6].mxu0  ;;  %v2804_v53 = vpop.f32.mrb[7].mxu1 }
 0xae7   : > { %v2225_v49 = vadd.f32 %v2221_v48, %v2141_v47  ;;  %v2793_v50 = vpop.f32.mrb[7].mxu0 }
 0xae9   : > { %v2309_v54 = vadd.f32 %v2305_v51, %v2225_v49 }
 0xaeb   : > { %v2317_v55 = vadd.f32 %v2532_v52, %v2309_v54 }
 0xaed   : > { %2319 = vst.msk [vmem:[#allocation5] sm:$0x3] %vm2318_vm8, %v2317_v55 }
 0xaee PF: > { %s3596_s2 = sld [smem:[#allocation10_spill]]  ;;  %s3008_s3 = smov [#allocation5]  }
 0xaef   : > { %s2327_s6 = sshll.u32 %s3008_s3, 4  ;;  %s2328_s6 = int_to_ptr.vmem [resolvable:$true] %s2327_s6 }
 0xaf0   : > { %s2956_s14 = scalar_lea.vmem %s2328_s6, 32  ;;  %p2963_p1 = scmp.lt.s32.totalorder %s2328_s6, %s2328_s6 }
 0xaf1   : > { %p2957_p12 = scmp.ne.s32.totalorder %s2328_s6, %s2956_s14  ;;  %p2964_p2 = scmp.lt.s32.totalorder %s2956_s14, %s2956_s14 }
 0xaf3   : > { %p2965_p3 = por %p2964_p2, %p2963_p1 }
 0xaf4   : > { %p2897_p11 = scmp.eq.s32.totalorder %s3596_s2, 1 }
 0xaf6   : > { %p2958_p13 = pnand %p2957_p12, %p2897_p11 }
 0xaf8   : > { %p2959_p0 = pneg %p2958_p13 }
 0xafa   : > { %p2966_p4 = pnand %p2965_p3, %p2959_p0 }
 0xafc   : > { %2969 = shalt.err (!%p2966_p4)
}
 0xafd   : > { %s3597_s7 = sld [smem:[#allocation19_spill]] }
 0xb03   : > { %s2970_s23 = scalar_lea.hbm %s3597_s7, 32 }
 0xb04   : > { %p2971_p5 = scmp.ne.s32.totalorder %s3597_s7, %s2970_s23  ;;  %p2976_p8 = scmp.lt.u32.totalorder %s2970_s23, %s3597_s7 }
 0xb06   : > { %p2972_p6 = pnand %p2971_p5, %p2897_p11 }
 0xb08   : > { %p2973_p7 = pneg %p2972_p6 }
 0xb0a   : > { %p2978_p9 = pnand %p2976_p8, %p2973_p7 }
 0xb0c   : > { %2981 = shalt.err (!%p2978_p9)
}
 0xb0d   : > { %2894 = dma.vmem_to_hbm [thread:$0]  (%p2897_p11), %s2328_s6, 32, %s3597_s7, [#allocation6]  }
 0xb0e   : > { %2989 = dma.done.wait (%p2897_p11), [#allocation6], 32  }
 0xb0f   : > { %2991 = vsyncadd (%p2897_p11), [#allocation6], 4294967264 }
 0xb10 PF: > { %s3598_s10 = sld [smem:[#allocation9_spill]] }
 0xb16   : > { %s29_s22 = sadd.s32 1, %s3598_s10  }
 0xb17   : > { %p26_p10 = scmp.ge.s32.totalorder %s29_s22, 4  }
 0xb19   :  { %28 = sbr.rel (!%p26_p10) target bundleno = 18 (0x12), region = 137 }
 0xb20   :  { %2346 = vsyncpa [#allocation6], 1 }
 0xb21   :  { %2348 = vsyncpa [#allocation6 + $0x1], 1 }

</bundles_post_ra>
